<compile_context>
chip_gen: v7x
topology: tpu7x:2x2x1
jax: 0.10.0
libtpu: 0.0.40
codegen_flags: <defaults>
</compile_context>

<pallas_src>
import functools

import jax
import jax.numpy as jnp
from jax import lax
from jax.experimental import pallas as pl
from jax.experimental.pallas import tpu as pltpu

F32 = jnp.float32
BF16 = jnp.bfloat16
_NEG_BIG = -3.0e38  # finite "-inf" sentinel for the masked max pool


def _rup(x, m):
    return ((x + m - 1) // m) * m


# ----------------------------- fused Pallas kernel -----------------------------

def _fused_gnn_kernel(eps_ref, valid_ref, atom_oh_ref, atom_emb_ref, vn_emb_ref,
                      batch_oh_ref, src_oh_ref, dst_oh_ref, bond_oh_ref,
                      bond_emb_ref, w1_ref, s1_ref, t1_ref, w2_ref, s2_ref, t2_ref,
                      vw1_ref, vs1_ref, vt1_ref, vw2_ref, vs2_ref, vt2_ref,
                      h_out_ref, graph_ref,          # outputs
                      h_scr, vn_scr,                 # VMEM scratch (persist across layers)
                      *, num_layers):
    l = pl.program_id(0)
    is_last = l == num_layers - 1

    # ---- layer 0: AtomEncoder (embedding as bf16 one-hot matmul) + virtual-node init
    @pl.when(l == 0)
    def _init():
        h_scr[...] = jnp.dot(atom_oh_ref[...], atom_emb_ref[...],
                             preferred_element_type=F32)
        vn_scr[...] = jnp.broadcast_to(vn_emb_ref[...], vn_scr.shape)

    batch_oh = batch_oh_ref[...]                      # (N_pad, G_pad) bf16
    h = h_scr[...]                                    # (N_pad, HP) f32

    # h_in = h + vn[batch]   (virtual-node broadcast)
    h_in = h + jnp.dot(batch_oh, vn_scr[...].astype(BF16), preferred_element_type=F32)
    h_in_bf = h_in.astype(BF16)

    # GINConv message: relu(h_in[src] + bond_emb[edge_attr])
    edge_emb = jnp.dot(bond_oh_ref[...], bond_emb_ref[0], preferred_element_type=F32)
    x_src = jnp.dot(src_oh_ref[...], h_in_bf, preferred_element_type=F32)   # gather
    msg = jnp.maximum(x_src + edge_emb, 0.0).astype(BF16)                   # (E_pad, HP)

    # scatter-add onto destination nodes via transposed contraction (no (N,E) operand)
    agg = lax.dot_general(dst_oh_ref[...], msg, (((0,), (0,)), ((), ())),
                          preferred_element_type=F32)                       # (N_pad, HP)

    # (1+eps)*h_in + agg, then MLP: Linear -> BN -> ReLU -> Linear, then outer BN
    # (biases + eval-mode BN folded into scale/shift epilogues).
    ope = 1.0 + eps_ref[l]
    pre = (h_in * ope + agg).astype(BF16)
    z = jnp.maximum(jnp.dot(pre, w1_ref[0], preferred_element_type=F32)
                    * s1_ref[0] + t1_ref[0], 0.0)                           # (N_pad, H2P)
    hn = jnp.dot(z.astype(BF16), w2_ref[0], preferred_element_type=F32) \
        * s2_ref[0] + t2_ref[0]                                             # (N_pad, HP)
    # ReLU on all but the last layer (dropout = identity at inference)
    hn = jnp.where(is_last, hn, jnp.maximum(hn, 0.0))
    h_new = hn + h_in                                 # residual=True (set by the module)
    h_scr[...] = h_new

    # virtual-node update (all but the last layer), uses the pre-conv node states h_in
    @pl.when(jnp.logical_not(is_last))
    def _vn_update():
        pooled = lax.dot_general(batch_oh, h_in_bf, (((0,), (0,)), ((), ())),
                                 preferred_element_type=F32)                # (G_pad, HP)
        vtmp = (pooled + vn_scr[...]).astype(BF16)
        t = jnp.maximum(jnp.dot(vtmp, vw1_ref[0], preferred_element_type=F32)
                        * vs1_ref[0] + vt1_ref[0], 0.0)
        vn_scr[...] = jnp.maximum(
            jnp.dot(t.astype(BF16), vw2_ref[0], preferred_element_type=F32)
            * vs2_ref[0] + vt2_ref[0], 0.0)

    # last layer: emit node features + fused global_max_pool (vectorized slab reduce,
    # single dense (G_pad, HP) store).
    @pl.when(is_last)
    def _emit():
        h_out_ref[...] = h_new
        g_pad, hp = graph_ref.shape
        cap = h_new.shape[0] // g_pad
        masked = jnp.where(valid_ref[...] > 0.5, h_new, _NEG_BIG)
        graph_ref[...] = jnp.max(masked.reshape(g_pad, cap, hp), axis=1)


# ----------------------------- wrapper / pallas_call -----------------------------

@functools.partial(jax.jit, static_argnames=("num_graphs", "max_nodes_per_graph"))
def gnn_forward(params, x_atom, edge_src, edge_dst, edge_attr, batch, *,
                num_graphs, max_nodes_per_graph):
    """Forward of GNN (encoder_type='gin-virtual', readout='max', JK='last')."""
    N = x_atom.shape[0]
    E = edge_src.shape[0]
    G = num_graphs
    H = params["atom_emb"].shape[1]
    A = params["atom_emb"].shape[0]
    B = params["layers"][0]["bond_emb"].shape[0]
    L = len(params["layers"])

    # padded, lane-dense sizes
    HP = _rup(H, 128)
    H2P = _rup(2 * H, 128)
    A_pad = _rup(A, 128)
    B_pad = _rup(B, 128)
    G_pad = max(8, _rup(G, 8))
    CAP = max(8, _rup(max_nodes_per_graph, 8))   # nodes-per-graph capacity (slab size)
    N_pad = G_pad * CAP
    E_pad = max(8, _rup(E, 8))

    i32 = jnp.int32
    # CAP-aligned node layout: node -> row batch*CAP + position-within-graph.
    # Assumes PyG-style batching: `batch` is sorted / graphs are contiguous.
    counts = jax.ops.segment_sum(jnp.ones((N,), i32), batch, num_segments=G)
    starts = jnp.concatenate([jnp.zeros((1,), counts.dtype), jnp.cumsum(counts)[:-1]])
    local = jnp.arange(N, dtype=i32) - starts[batch].astype(i32)
    node_row = batch.astype(i32) * CAP + local                       # (N,)

    row_atom = jnp.full((N_pad,), -1, i32).at[node_row].set(x_atom.astype(i32))
    row_graph = jnp.full((N_pad,), -1, i32).at[node_row].set(batch.astype(i32))
    valid = (row_graph >= 0).astype(F32)[:, None]                    # (N_pad, 1)

    def _pad1(a, n, fill):
        return jnp.concatenate([a, jnp.full((n - a.shape[0],), fill, a.dtype)])

    src_row = _pad1(node_row[edge_src], E_pad, -1)
    dst_row = _pad1(node_row[edge_dst], E_pad, -1)
    edge_attr_p = _pad1(edge_attr.astype(i32), E_pad, -1)

    # structural glue as bf16 one-hot matrices (0/1 exact in bf16); invalid index -> zero row
    atom_oh = jax.nn.one_hot(row_atom, A_pad, dtype=BF16)            # (N_pad, A_pad)
    batch_oh = jax.nn.one_hot(row_graph, G_pad, dtype=BF16)          # (N_pad, G_pad)
    src_oh = jax.nn.one_hot(src_row, N_pad, dtype=BF16)              # (E_pad, N_pad)
    dst_oh = jax.nn.one_hot(dst_row, N_pad, dtype=BF16)              # (E_pad, N_pad)
    bond_oh = jax.nn.one_hot(edge_attr_p, B_pad, dtype=BF16)         # (E_pad, B_pad)

    # ---- pack / pad / bf16-cast parameters (zero-padded lanes keep padded channels at 0)
    def _pad2(a, rows, cols):
        return jnp.zeros((rows, cols), a.dtype).at[: a.shape[0], : a.shape[1]].set(a)

    def _padvec(v, cols):
        return jnp.zeros((1, cols), v.dtype).at[0, : v.shape[0]].set(v)

    atom_emb_p = _pad2(params["atom_emb"], A_pad, HP).astype(BF16)
    vn_emb_p = _padvec(params["vn_emb"][0], HP).astype(F32)

    def _fold(scale, bias, shift):
        # eval-mode BN fold (running_mean=0 here; real checkpoints: shift -= scale*mean)
        return _padvec(scale, shift_cols), _padvec(scale * bias + shift, shift_cols)

    bond_s, w1_s, s1_s, t1_s, w2_s, s2_s, t2_s = [], [], [], [], [], [], []
    vw1_s, vs1_s, vt1_s, vw2_s, vs2_s, vt2_s = [], [], [], [], [], []
    for lp in params["layers"]:
        bond_s.append(_pad2(lp["bond_emb"], B_pad, HP).astype(BF16))
        w1_s.append(_pad2(lp["w1"], HP, H2P).astype(BF16))
        shift_cols = H2P
        a, b = _fold(lp["bn1_scale"], lp["b1"], lp["bn1_shift"])
        s1_s.append(a); t1_s.append(b)
        w2_s.append(_pad2(lp["w2"], H2P, HP).astype(BF16))
        shift_cols = HP
        a, b = _fold(lp["bn_scale"], lp["b2"], lp["bn_shift"])
        s2_s.append(a); t2_s.append(b)

        vp = lp.get("vn_mlp")
        if vp is not None:
            vw1_s.append(_pad2(vp["w1"], HP, H2P).astype(BF16))
            shift_cols = H2P
            a, b = _fold(vp["bn1_scale"], vp["b1"], vp["bn1_shift"])
            vs1_s.append(a); vt1_s.append(b)
            vw2_s.append(_pad2(vp["w2"], H2P, HP).astype(BF16))
            shift_cols = HP
            a, b = _fold(vp["bn2_scale"], vp["b2"], vp["bn2_shift"])
            vs2_s.append(a); vt2_s.append(b)
        else:  # last layer: unused placeholders (gated off by pl.when in the kernel)
            vw1_s.append(jnp.zeros((HP, H2P), BF16))
            vs1_s.append(jnp.zeros((1, H2P), F32)); vt1_s.append(jnp.zeros((1, H2P), F32))
            vw2_s.append(jnp.zeros((H2P, HP), BF16))
            vs2_s.append(jnp.zeros((1, HP), F32)); vt2_s.append(jnp.zeros((1, HP), F32))

    stk = jnp.stack
    bond_emb_s = stk(bond_s); w1_a = stk(w1_s); s1_a = stk(s1_s); t1_a = stk(t1_s)
    w2_a = stk(w2_s); s2_a = stk(s2_s); t2_a = stk(t2_s)
    vw1_a = stk(vw1_s); vs1_a = stk(vs1_s); vt1_a = stk(vt1_s)
    vw2_a = stk(vw2_s); vs2_a = stk(vs2_s); vt2_a = stk(vt2_s)
    eps_arr = jnp.asarray([lp["eps"] for lp in params["layers"]], dtype=F32)   # (L,)

    # ---- BlockSpecs
    def _full_spec(shape):
        zeros = (0,) * len(shape)
        return pl.BlockSpec(shape, lambda l, _z=zeros: _z)

    def _layer_spec(shape):
        tail = (0,) * (len(shape) - 1)
        return pl.BlockSpec(shape, lambda l, _t=tail: (l,) + _t)

    smem_spec = pl.BlockSpec(memory_space=pltpu.MemorySpace.SMEM)

    in_specs = [
        smem_spec,                         # eps (L,) f32 scalars in SMEM
        _full_spec((N_pad, 1)),            # valid mask
        _full_spec((N_pad, A_pad)),        # atom one-hot
        _full_spec((A_pad, HP)),           # atom embedding table
        _full_spec((1, HP)),               # virtual-node embedding
        _full_spec((N_pad, G_pad)),        # batch one-hot
        _full_spec((E_pad, N_pad)),        # src one-hot (gather)
        _full_spec((E_pad, N_pad)),        # dst one-hot (scatter via transposed dot)
        _full_spec((E_pad, B_pad)),        # bond one-hot
        _layer_spec((1, B_pad, HP)),       # bond embedding (per layer)
        _layer_spec((1, HP, H2P)),         # w1
        _layer_spec((1, 1, H2P)),          # s1
        _layer_spec((1, 1, H2P)),          # t1
        _layer_spec((1, H2P, HP)),         # w2
        _layer_spec((1, 1, HP)),           # s2
        _layer_spec((1, 1, HP)),           # t2
        _layer_spec((1, HP, H2P)),         # vn w1
        _layer_spec((1, 1, H2P)),          # vn s1
        _layer_spec((1, 1, H2P)),          # vn t1
        _layer_spec((1, H2P, HP)),         # vn w2
        _layer_spec((1, 1, HP)),           # vn s2
        _layer_spec((1, 1, HP)),           # vn t2
    ]
    out_specs = (pl.BlockSpec((N_pad, HP), lambda l: (0, 0)),
                 pl.BlockSpec((G_pad, HP), lambda l: (0, 0)))

    kernel = functools.partial(_fused_gnn_kernel, num_layers=L)
    h_pad, graph_pad = pl.pallas_call(
        kernel,
        out_shape=(jax.ShapeDtypeStruct((N_pad, HP), F32),
                   jax.ShapeDtypeStruct((G_pad, HP), F32)),
        grid=(L,),
        in_specs=in_specs,
        out_specs=out_specs,
        scratch_shapes=[pltpu.VMEM((N_pad, HP), F32),   # node-state carry across layers
                        pltpu.VMEM((G_pad, HP), F32)],  # virtual-node carry
        compiler_params=pltpu.CompilerParams(
            dimension_semantics=("arbitrary",),
            vmem_limit_bytes=32 * 1024 * 1024),
    )(eps_arr, valid, atom_oh, atom_emb_p, vn_emb_p, batch_oh, src_oh, dst_oh,
      bond_oh, bond_emb_s, w1_a, s1_a, t1_a, w2_a, s2_a, t2_a,
      vw1_a, vs1_a, vt1_a, vw2_a, vs2_a, vt2_a)

    # un-pad: gather nodes back to their original order, slice real lanes / graphs
    h_node = h_pad[node_row][:, :H]
    h_rep = graph_pad[:G, :H]
    return {"graph": h_rep, "node": h_node}   # JK='last', readout='max'


# ----------------------------- pure-JAX reference -----------------------------

def gnn_forward_ref(params, x_atom, edge_src, edge_dst, edge_attr, batch, num_graphs):
    H = params["atom_emb"].shape[1]
    G = num_graphs
    N = x_atom.shape[0]
    h = params["atom_emb"][x_atom]
    vn = jnp.broadcast_to(params["vn_emb"], (G, H)).astype(F32)
    L = len(params["layers"])
    for l, lp in enumerate(params["layers"]):
        h_in = h + vn[batch]
        edge_emb = lp["bond_emb"][edge_attr]
        msg = jax.nn.relu(h_in[edge_src] + edge_emb)
        agg = jax.ops.segment_sum(msg, edge_dst, num_segments=N)
        pre = (1.0 + lp["eps"]) * h_in + agg
        z = jax.nn.relu((pre @ lp["w1"] + lp["b1"]) * lp["bn1_scale"] + lp["bn1_shift"])
        hn = (z @ lp["w2"] + lp["b2"]) * lp["bn_scale"] + lp["bn_shift"]
        if l < L - 1:
            hn = jax.nn.relu(hn)
        h = hn + h_in
        if l < L - 1:
            vp = lp["vn_mlp"]
            pooled = jax.ops.segment_sum(h_in, batch, num_segments=G) + vn
            t = jax.nn.relu((pooled @ vp["w1"] + vp["b1"]) * vp["bn1_scale"] + vp["bn1_shift"])
            vn = jax.nn.relu((t @ vp["w2"] + vp["b2"]) * vp["bn2_scale"] + vp["bn2_shift"])
    h_rep = jax.ops.segment_max(h, batch, num_segments=G)
    return {"graph": h_rep, "node": h}


# ----------------------------- parameter init -----------------------------

def init_params(key, num_layer=2, hidden=32, num_atom=120, num_bond=8):
    def nrm(k, shape, scale=0.1):
        return scale * jax.random.normal(k, shape, dtype=F32)

    keys = iter(jax.random.split(key, 128))

    def bn(k, dim):
        k1, k2 = jax.random.split(k)
        gamma = 1.0 + 0.1 * jax.random.normal(k1, (dim,), dtype=F32)
        beta = 0.1 * jax.random.normal(k2, (dim,), dtype=F32)
        # eval-mode fold with running_mean=0, running_var=1
        scale = gamma / jnp.sqrt(1.0 + 1e-5)
        return scale, beta

    params = {
        "atom_emb": nrm(next(keys), (num_atom, hidden)),
        "vn_emb": jnp.zeros((1, hidden), F32),   # torch: constant_(0)
        "layers": [],
    }
    for l in range(num_layer):
        bn1_s, bn1_b = bn(next(keys), 2 * hidden)
        bn_s, bn_b = bn(next(keys), hidden)
        lp = {
            "bond_emb": nrm(next(keys), (num_bond, hidden)),
            "eps": 0.0,
            "w1": nrm(next(keys), (hidden, 2 * hidden)),
            "b1": nrm(next(keys), (2 * hidden,), 0.05),
            "bn1_scale": bn1_s, "bn1_shift": bn1_b,
            "w2": nrm(next(keys), (2 * hidden, hidden)),
            "b2": nrm(next(keys), (hidden,), 0.05),
            "bn_scale": bn_s, "bn_shift": bn_b,
        }
        if l < num_layer - 1:
            vbn1_s, vbn1_b = bn(next(keys), 2 * hidden)
            vbn2_s, vbn2_b = bn(next(keys), hidden)
            lp["vn_mlp"] = {
                "w1": nrm(next(keys), (hidden, 2 * hidden)),
                "b1": nrm(next(keys), (2 * hidden,), 0.05),
                "bn1_scale": vbn1_s, "bn1_shift": vbn1_b,
                "w2": nrm(next(keys), (2 * hidden, hidden)),
                "b2": nrm(next(keys), (hidden,), 0.05),
                "bn2_scale": vbn2_s, "bn2_shift": vbn2_b,
            }
        params["layers"].append(lp)
    return params


# ----------------------------- main -----------------------------

if __name__ == "__main__":
    key = jax.random.PRNGKey(0)
    pkey, k_atom, k_edge = jax.random.split(key, 3)

    num_layer, hidden = 2, 32
    params = init_params(pkey, num_layer=num_layer, hidden=hidden)

    # synthetic batched molecular graph: 2 graphs x 8 nodes, bidirectional chains
    nodes_per_graph, G = 8, 2
    N = nodes_per_graph * G
    x_atom = jax.random.randint(k_atom, (N,), 0, 119)
    batch = jnp.repeat(jnp.arange(G, dtype=jnp.int32), nodes_per_graph)

    src, dst = [], []
    for g in range(G):
        base = g * nodes_per_graph
        for i in range(nodes_per_graph - 1):
            src += [base + i, base + i + 1]
            dst += [base + i + 1, base + i]
    edge_src = jnp.array(src, jnp.int32)
    edge_dst = jnp.array(dst, jnp.int32)
    E = edge_src.shape[0]
    edge_attr = jax.random.randint(k_edge, (E,), 0, 8)

    out = gnn_forward(params, x_atom, edge_src, edge_dst, edge_attr, batch,
                      num_graphs=G, max_nodes_per_graph=nodes_per_graph)
    jax.block_until_ready(out)

    ref = gnn_forward_ref(params, x_atom, edge_src, edge_dst, edge_attr, batch, G)

    assert out["node"].shape == (N, hidden)
    assert out["graph"].shape == (G, hidden)
    assert bool(jnp.all(jnp.isfinite(out["node"]))) and bool(jnp.all(jnp.isfinite(out["graph"])))
    # bf16 MXU operands / f32 accumulation vs f32 reference -> loose tolerance
    assert float(jnp.max(jnp.abs(out["node"] - ref["node"]))) < 5e-2
    assert float(jnp.max(jnp.abs(out["graph"] - ref["graph"]))) < 5e-2
    print("KERNEL_OK")
</pallas_src>

<mosaic_0001>
module attributes {stable_mosaic.version = 11 : i64} {
  func.func private @main(%arg0: i32) attributes {dimension_semantics = [#tpu.dimension_semantics<core_parallel>], iteration_bounds = array<i64: 2>, tpu.core_type = #tpu.core_type<sc_scalar_subcore>, window_params = []} {
    return
  }
}

module attributes {stable_mosaic.version = 11 : i64} {
  func.func private @main(%arg0: i32) attributes {dimension_semantics = [#tpu.dimension_semantics<core_parallel>], iteration_bounds = array<i64: 2>, tpu.core_type = #tpu.core_type<sc_scalar_subcore>, window_params = []} {
    return
  }
}

module attributes {stable_mosaic.version = 11 : i64} {
  func.func @_fused_gnn_kernel(%arg0: i32, %arg1: memref<2xf32, #tpu.memory_space<smem>>, %arg2: memref<64x1xf32, #tpu.memory_space<vmem>>, %arg3: memref<64x128xbf16, #tpu.memory_space<vmem>>, %arg4: memref<128x128xbf16, #tpu.memory_space<vmem>>, %arg5: memref<1x128xf32, #tpu.memory_space<vmem>>, %arg6: memref<64x8xbf16, #tpu.memory_space<vmem>>, %arg7: memref<32x64xbf16, #tpu.memory_space<vmem>>, %arg8: memref<32x64xbf16, #tpu.memory_space<vmem>>, %arg9: memref<32x128xbf16, #tpu.memory_space<vmem>>, %arg10: memref<1x128x128xbf16, #tpu.memory_space<vmem>>, %arg11: memref<1x128x128xbf16, #tpu.memory_space<vmem>>, %arg12: memref<1x1x128xf32, #tpu.memory_space<vmem>>, %arg13: memref<1x1x128xf32, #tpu.memory_space<vmem>>, %arg14: memref<1x128x128xbf16, #tpu.memory_space<vmem>>, %arg15: memref<1x1x128xf32, #tpu.memory_space<vmem>>, %arg16: memref<1x1x128xf32, #tpu.memory_space<vmem>>, %arg17: memref<1x128x128xbf16, #tpu.memory_space<vmem>>, %arg18: memref<1x1x128xf32, #tpu.memory_space<vmem>>, %arg19: memref<1x1x128xf32, #tpu.memory_space<vmem>>, %arg20: memref<1x128x128xbf16, #tpu.memory_space<vmem>>, %arg21: memref<1x1x128xf32, #tpu.memory_space<vmem>>, %arg22: memref<1x1x128xf32, #tpu.memory_space<vmem>>, %arg23: memref<64x128xf32, #tpu.memory_space<vmem>>, %arg24: memref<8x128xf32, #tpu.memory_space<vmem>>, %arg25: memref<64x128xf32, #tpu.memory_space<vmem>>, %arg26: memref<8x128xf32, #tpu.memory_space<vmem>>) attributes {dimension_semantics = [#tpu.dimension_semantics<arbitrary>], iteration_bounds = array<i64: 2>, scalar_prefetch = 0 : i64, scratch_operands = 2 : i64, tpu.core_type = #tpu.core_type<tc>, window_params = [{transform_indices = @transform_0, window_bounds = array<i64: 2>}, {pipeline_mode = #tpu.pipeline_mode<synchronous>, transform_indices = @transform_1, window_bounds = array<i64: 64, 1>}, {pipeline_mode = #tpu.pipeline_mode<synchronous>, transform_indices = @transform_2, window_bounds = array<i64: 64, 128>}, {pipeline_mode = #tpu.pipeline_mode<synchronous>, transform_indices = @transform_3, window_bounds = array<i64: 128, 128>}, {pipeline_mode = #tpu.pipeline_mode<synchronous>, transform_indices = @transform_4, window_bounds = array<i64: 1, 128>}, {pipeline_mode = #tpu.pipeline_mode<synchronous>, transform_indices = @transform_5, window_bounds = array<i64: 64, 8>}, {pipeline_mode = #tpu.pipeline_mode<synchronous>, transform_indices = @transform_6, window_bounds = array<i64: 32, 64>}, {pipeline_mode = #tpu.pipeline_mode<synchronous>, transform_indices = @transform_7, window_bounds = array<i64: 32, 64>}, {pipeline_mode = #tpu.pipeline_mode<synchronous>, transform_indices = @transform_8, window_bounds = array<i64: 32, 128>}, {transform_indices = @transform_9, window_bounds = array<i64: 1, 128, 128>}, {transform_indices = @transform_10, window_bounds = array<i64: 1, 128, 128>}, {transform_indices = @transform_11, window_bounds = array<i64: 1, 1, 128>}, {transform_indices = @transform_12, window_bounds = array<i64: 1, 1, 128>}, {transform_indices = @transform_13, window_bounds = array<i64: 1, 128, 128>}, {transform_indices = @transform_14, window_bounds = array<i64: 1, 1, 128>}, {transform_indices = @transform_15, window_bounds = array<i64: 1, 1, 128>}, {transform_indices = @transform_16, window_bounds = array<i64: 1, 128, 128>}, {transform_indices = @transform_17, window_bounds = array<i64: 1, 1, 128>}, {transform_indices = @transform_18, window_bounds = array<i64: 1, 1, 128>}, {transform_indices = @transform_19, window_bounds = array<i64: 1, 128, 128>}, {transform_indices = @transform_20, window_bounds = array<i64: 1, 1, 128>}, {transform_indices = @transform_21, window_bounds = array<i64: 1, 1, 128>}, {pipeline_mode = #tpu.pipeline_mode<synchronous>, transform_indices = @transform_22, window_bounds = array<i64: 64, 128>}, {pipeline_mode = #tpu.pipeline_mode<synchronous>, transform_indices = @transform_23, window_bounds = array<i64: 8, 128>}]} {
    %c1_i32 = arith.constant 1 : i32
    %0 = arith.cmpi eq, %arg0, %c1_i32 : i32
    %c0_i32 = arith.constant 0 : i32
    %1 = arith.cmpi eq, %arg0, %c0_i32 : i32
    %2 = arith.extui %1 : i1 to i32
    %c0_i32_0 = arith.constant 0 : i32
    %3 = arith.cmpi ne, %2, %c0_i32_0 : i32
    scf.if %3 {
      %c0_46 = arith.constant 0 : index
      %c0_47 = arith.constant 0 : index
      %65 = vector.load %arg3[%c0_46, %c0_47] : memref<64x128xbf16, #tpu.memory_space<vmem>>, vector<64x128xbf16>
      %c0_48 = arith.constant 0 : index
      %c0_49 = arith.constant 0 : index
      %66 = vector.load %arg4[%c0_48, %c0_49] : memref<128x128xbf16, #tpu.memory_space<vmem>>, vector<128x128xbf16>
      %cst_50 = arith.constant dense<0.000000e+00> : vector<64x128xf32>
      %67 = tpu.matmul %65, %66, %cst_50 {dimension_numbers = #tpu.dot_dimension_numbers<[1], [0], [0], [1], [0, 0, 1, 1], [], []>} : vector<64x128xbf16>, vector<128x128xbf16>, vector<64x128xf32> -> vector<64x128xf32>
      %c0_51 = arith.constant 0 : index
      %c0_52 = arith.constant 0 : index
      %68 = vector.load %arg25[%c0_51, %c0_52] : memref<64x128xf32, #tpu.memory_space<vmem>>, vector<64x128xf32>
      tpu.vector_store %arg25[%c0_51, %c0_52], %67 {strides = array<i32>} : memref<64x128xf32, #tpu.memory_space<vmem>>, vector<64x128xf32>,
      %c0_53 = arith.constant 0 : index
      %c0_54 = arith.constant 0 : index
      %69 = vector.load %arg5[%c0_53, %c0_54] : memref<1x128xf32, #tpu.memory_space<vmem>>, vector<1x128xf32>
      %70 = vector.shape_cast %69 : vector<1x128xf32> to vector<1x128xf32>
      %71 = vector.broadcast %70 : vector<1x128xf32> to vector<8x128xf32>
      %c0_55 = arith.constant 0 : index
      %c0_56 = arith.constant 0 : index
      %72 = vector.load %arg26[%c0_55, %c0_56] : memref<8x128xf32, #tpu.memory_space<vmem>>, vector<8x128xf32>
      tpu.vector_store %arg26[%c0_55, %c0_56], %71 {strides = array<i32>} : memref<8x128xf32, #tpu.memory_space<vmem>>, vector<8x128xf32>,
    } else {
    }
    %c0 = arith.constant 0 : index
    %c0_1 = arith.constant 0 : index
    %4 = vector.load %arg6[%c0, %c0_1] : memref<64x8xbf16, #tpu.memory_space<vmem>>, vector<64x8xbf16>
    %c0_2 = arith.constant 0 : index
    %c0_3 = arith.constant 0 : index
    %5 = vector.load %arg25[%c0_2, %c0_3] : memref<64x128xf32, #tpu.memory_space<vmem>>, vector<64x128xf32>
    %c0_4 = arith.constant 0 : index
    %c0_5 = arith.constant 0 : index
    %6 = vector.load %arg26[%c0_4, %c0_5] : memref<8x128xf32, #tpu.memory_space<vmem>>, vector<8x128xf32>
    %7 = arith.truncf %6 : vector<8x128xf32> to vector<8x128xbf16>
    %cst = arith.constant dense<0.000000e+00> : vector<64x128xf32>
    %8 = tpu.matmul %4, %7, %cst {dimension_numbers = #tpu.dot_dimension_numbers<[1], [0], [0], [1], [0, 0, 1, 1], [], []>} : vector<64x8xbf16>, vector<8x128xbf16>, vector<64x128xf32> -> vector<64x128xf32>
    %9 = arith.addf %5, %8 : vector<64x128xf32>
    %10 = arith.truncf %9 : vector<64x128xf32> to vector<64x128xbf16>
    %c0_6 = arith.constant 0 : index
    %c0_7 = arith.constant 0 : index
    %11 = vector.load %arg9[%c0_6, %c0_7] : memref<32x128xbf16, #tpu.memory_space<vmem>>, vector<32x128xbf16>
    %c0_8 = arith.constant 0 : index
    %c0_9 = arith.constant 0 : index
    %c0_10 = arith.constant 0 : index
    %12 = vector.load %arg10[%c0_8, %c0_9, %c0_10] : memref<1x128x128xbf16, #tpu.memory_space<vmem>>, vector<1x128x128xbf16>
    %13 = vector.shape_cast %12 : vector<1x128x128xbf16> to vector<128x128xbf16>
    %cst_11 = arith.constant dense<0.000000e+00> : vector<32x128xf32>
    %14 = tpu.matmul %11, %13, %cst_11 {dimension_numbers = #tpu.dot_dimension_numbers<[1], [0], [0], [1], [0, 0, 1, 1], [], []>} : vector<32x128xbf16>, vector<128x128xbf16>, vector<32x128xf32> -> vector<32x128xf32>
    %c0_12 = arith.constant 0 : index
    %c0_13 = arith.constant 0 : index
    %15 = vector.load %arg7[%c0_12, %c0_13] : memref<32x64xbf16, #tpu.memory_space<vmem>>, vector<32x64xbf16>
    %cst_14 = arith.constant dense<0.000000e+00> : vector<32x128xf32>
    %16 = tpu.matmul %15, %10, %cst_14 {dimension_numbers = #tpu.dot_dimension_numbers<[1], [0], [0], [1], [0, 0, 1, 1], [], []>} : vector<32x64xbf16>, vector<64x128xbf16>, vector<32x128xf32> -> vector<32x128xf32>
    %17 = arith.addf %16, %14 : vector<32x128xf32>
    %cst_15 = arith.constant 0.000000e+00 : f32
    %18 = vector.broadcast %cst_15 : f32 to vector<32x128xf32>
    %19 = arith.maximumf %17, %18 : vector<32x128xf32>
    %20 = arith.truncf %19 : vector<32x128xf32> to vector<32x128xbf16>
    %c0_16 = arith.constant 0 : index
    %c0_17 = arith.constant 0 : index
    %21 = vector.load %arg8[%c0_16, %c0_17] : memref<32x64xbf16, #tpu.memory_space<vmem>>, vector<32x64xbf16>
    %cst_18 = arith.constant dense<0.000000e+00> : vector<64x128xf32>
    %22 = tpu.matmul %21, %20, %cst_18 {dimension_numbers = #tpu.dot_dimension_numbers<[0], [0], [1], [1], [0, 1, 1, 1], [], []>} : vector<32x64xbf16>, vector<32x128xbf16>, vector<64x128xf32> -> vector<64x128xf32>
    %23 = arith.index_cast %arg0 : i32 to index
    %24 = memref.load %arg1[%23] : memref<2xf32, #tpu.memory_space<smem>>
    %cst_19 = arith.constant 1.000000e+00 : f32
    %25 = arith.addf %cst_19, %24 : f32
    %26 = vector.broadcast %25 : f32 to vector<64x128xf32>
    %27 = arith.mulf %9, %26 : vector<64x128xf32>
    %28 = arith.addf %27, %22 : vector<64x128xf32>
    %29 = arith.truncf %28 : vector<64x128xf32> to vector<64x128xbf16>
    %c0_20 = arith.constant 0 : index
    %c0_21 = arith.constant 0 : index
    %c0_22 = arith.constant 0 : index
    %30 = vector.load %arg11[%c0_20, %c0_21, %c0_22] : memref<1x128x128xbf16, #tpu.memory_space<vmem>>, vector<1x128x128xbf16>
    %31 = vector.shape_cast %30 : vector<1x128x128xbf16> to vector<128x128xbf16>
    %cst_23 = arith.constant dense<0.000000e+00> : vector<64x128xf32>
    %32 = tpu.matmul %29, %31, %cst_23 {dimension_numbers = #tpu.dot_dimension_numbers<[1], [0], [0], [1], [0, 0, 1, 1], [], []>} : vector<64x128xbf16>, vector<128x128xbf16>, vector<64x128xf32> -> vector<64x128xf32>
    %c0_24 = arith.constant 0 : index
    %c0_25 = arith.constant 0 : index
    %c0_26 = arith.constant 0 : index
    %33 = vector.load %arg12[%c0_24, %c0_25, %c0_26] : memref<1x1x128xf32, #tpu.memory_space<vmem>>, vector<1x1x128xf32>
    %34 = vector.shape_cast %33 : vector<1x1x128xf32> to vector<1x128xf32>
    %35 = vector.broadcast %34 : vector<1x128xf32> to vector<64x128xf32>
    %36 = arith.mulf %32, %35 : vector<64x128xf32>
    %c0_27 = arith.constant 0 : index
    %c0_28 = arith.constant 0 : index
    %c0_29 = arith.constant 0 : index
    %37 = vector.load %arg13[%c0_27, %c0_28, %c0_29] : memref<1x1x128xf32, #tpu.memory_space<vmem>>, vector<1x1x128xf32>
    %38 = vector.shape_cast %37 : vector<1x1x128xf32> to vector<1x128xf32>
    %39 = vector.broadcast %38 : vector<1x128xf32> to vector<64x128xf32>
    %40 = arith.addf %36, %39 : vector<64x128xf32>
    %cst_30 = arith.constant 0.000000e+00 : f32
    %41 = vector.broadcast %cst_30 : f32 to vector<64x128xf32>
    %42 = arith.maximumf %40, %41 : vector<64x128xf32>
    %43 = arith.truncf %42 : vector<64x128xf32> to vector<64x128xbf16>
    %c0_31 = arith.constant 0 : index
    %c0_32 = arith.constant 0 : index
    %c0_33 = arith.constant 0 : index
    %44 = vector.load %arg14[%c0_31, %c0_32, %c0_33] : memref<1x128x128xbf16, #tpu.memory_space<vmem>>, vector<1x128x128xbf16>
    %45 = vector.shape_cast %44 : vector<1x128x128xbf16> to vector<128x128xbf16>
    %cst_34 = arith.constant dense<0.000000e+00> : vector<64x128xf32>
    %46 = tpu.matmul %43, %45, %cst_34 {dimension_numbers = #tpu.dot_dimension_numbers<[1], [0], [0], [1], [0, 0, 1, 1], [], []>} : vector<64x128xbf16>, vector<128x128xbf16>, vector<64x128xf32> -> vector<64x128xf32>
    %c0_35 = arith.constant 0 : index
    %c0_36 = arith.constant 0 : index
    %c0_37 = arith.constant 0 : index
    %47 = vector.load %arg15[%c0_35, %c0_36, %c0_37] : memref<1x1x128xf32, #tpu.memory_space<vmem>>, vector<1x1x128xf32>
    %48 = vector.shape_cast %47 : vector<1x1x128xf32> to vector<1x128xf32>
    %49 = vector.broadcast %48 : vector<1x128xf32> to vector<64x128xf32>
    %50 = arith.mulf %46, %49 : vector<64x128xf32>
    %c0_38 = arith.constant 0 : index
    %c0_39 = arith.constant 0 : index
    %c0_40 = arith.constant 0 : index
    %51 = vector.load %arg16[%c0_38, %c0_39, %c0_40] : memref<1x1x128xf32, #tpu.memory_space<vmem>>, vector<1x1x128xf32>
    %52 = vector.shape_cast %51 : vector<1x1x128xf32> to vector<1x128xf32>
    %53 = vector.broadcast %52 : vector<1x128xf32> to vector<64x128xf32>
    %54 = arith.addf %50, %53 : vector<64x128xf32>
    %cst_41 = arith.constant 0.000000e+00 : f32
    %55 = vector.broadcast %cst_41 : f32 to vector<64x128xf32>
    %56 = arith.maximumf %54, %55 : vector<64x128xf32>
    %57 = arith.select %0, %54, %56 : vector<64x128xf32>
    %58 = arith.addf %57, %9 : vector<64x128xf32>
    %c0_42 = arith.constant 0 : index
    %c0_43 = arith.constant 0 : index
    %59 = vector.load %arg25[%c0_42, %c0_43] : memref<64x128xf32, #tpu.memory_space<vmem>>, vector<64x128xf32>
    tpu.vector_store %arg25[%c0_42, %c0_43], %58 {strides = array<i32>} : memref<64x128xf32, #tpu.memory_space<vmem>>, vector<64x128xf32>,
    %true = arith.constant true
    %60 = arith.xori %0, %true : i1
    %61 = arith.extui %60 : i1 to i32
    %c0_i32_44 = arith.constant 0 : i32
    %62 = arith.cmpi ne, %61, %c0_i32_44 : i32
    scf.if %62 {
      %cst_46 = arith.constant dense<0.000000e+00> : vector<8x128xf32>
      %65 = tpu.matmul %4, %10, %cst_46 {dimension_numbers = #tpu.dot_dimension_numbers<[0], [0], [1], [1], [0, 1, 1, 1], [], []>} : vector<64x8xbf16>, vector<64x128xbf16>, vector<8x128xf32> -> vector<8x128xf32>
      %c0_47 = arith.constant 0 : index
      %c0_48 = arith.constant 0 : index
      %66 = vector.load %arg26[%c0_47, %c0_48] : memref<8x128xf32, #tpu.memory_space<vmem>>, vector<8x128xf32>
      %67 = arith.addf %65, %66 : vector<8x128xf32>
      %68 = arith.truncf %67 : vector<8x128xf32> to vector<8x128xbf16>
      %c0_49 = arith.constant 0 : index
      %c0_50 = arith.constant 0 : index
      %c0_51 = arith.constant 0 : index
      %69 = vector.load %arg17[%c0_49, %c0_50, %c0_51] : memref<1x128x128xbf16, #tpu.memory_space<vmem>>, vector<1x128x128xbf16>
      %70 = vector.shape_cast %69 : vector<1x128x128xbf16> to vector<128x128xbf16>
      %cst_52 = arith.constant dense<0.000000e+00> : vector<8x128xf32>
      %71 = tpu.matmul %68, %70, %cst_52 {dimension_numbers = #tpu.dot_dimension_numbers<[1], [0], [0], [1], [0, 0, 1, 1], [], []>} : vector<8x128xbf16>, vector<128x128xbf16>, vector<8x128xf32> -> vector<8x128xf32>
      %c0_53 = arith.constant 0 : index
      %c0_54 = arith.constant 0 : index
      %c0_55 = arith.constant 0 : index
      %72 = vector.load %arg18[%c0_53, %c0_54, %c0_55] : memref<1x1x128xf32, #tpu.memory_space<vmem>>, vector<1x1x128xf32>
      %73 = vector.shape_cast %72 : vector<1x1x128xf32> to vector<1x128xf32>
      %74 = vector.broadcast %73 : vector<1x128xf32> to vector<8x128xf32>
      %75 = arith.mulf %71, %74 : vector<8x128xf32>
      %c0_56 = arith.constant 0 : index
      %c0_57 = arith.constant 0 : index
      %c0_58 = arith.constant 0 : index
      %76 = vector.load %arg19[%c0_56, %c0_57, %c0_58] : memref<1x1x128xf32, #tpu.memory_space<vmem>>, vector<1x1x128xf32>
      %77 = vector.shape_cast %76 : vector<1x1x128xf32> to vector<1x128xf32>
      %78 = vector.broadcast %77 : vector<1x128xf32> to vector<8x128xf32>
      %79 = arith.addf %75, %78 : vector<8x128xf32>
      %cst_59 = arith.constant 0.000000e+00 : f32
      %80 = vector.broadcast %cst_59 : f32 to vector<8x128xf32>
      %81 = arith.maximumf %79, %80 : vector<8x128xf32>
      %82 = arith.truncf %81 : vector<8x128xf32> to vector<8x128xbf16>
      %c0_60 = arith.constant 0 : index
      %c0_61 = arith.constant 0 : index
      %c0_62 = arith.constant 0 : index
      %83 = vector.load %arg20[%c0_60, %c0_61, %c0_62] : memref<1x128x128xbf16, #tpu.memory_space<vmem>>, vector<1x128x128xbf16>
      %84 = vector.shape_cast %83 : vector<1x128x128xbf16> to vector<128x128xbf16>
      %cst_63 = arith.constant dense<0.000000e+00> : vector<8x128xf32>
      %85 = tpu.matmul %82, %84, %cst_63 {dimension_numbers = #tpu.dot_dimension_numbers<[1], [0], [0], [1], [0, 0, 1, 1], [], []>} : vector<8x128xbf16>, vector<128x128xbf16>, vector<8x128xf32> -> vector<8x128xf32>
      %c0_64 = arith.constant 0 : index
      %c0_65 = arith.constant 0 : index
      %c0_66 = arith.constant 0 : index
      %86 = vector.load %arg21[%c0_64, %c0_65, %c0_66] : memref<1x1x128xf32, #tpu.memory_space<vmem>>, vector<1x1x128xf32>
      %87 = vector.shape_cast %86 : vector<1x1x128xf32> to vector<1x128xf32>
      %88 = vector.broadcast %87 : vector<1x128xf32> to vector<8x128xf32>
      %89 = arith.mulf %85, %88 : vector<8x128xf32>
      %c0_67 = arith.constant 0 : index
      %c0_68 = arith.constant 0 : index
      %c0_69 = arith.constant 0 : index
      %90 = vector.load %arg22[%c0_67, %c0_68, %c0_69] : memref<1x1x128xf32, #tpu.memory_space<vmem>>, vector<1x1x128xf32>
      %91 = vector.shape_cast %90 : vector<1x1x128xf32> to vector<1x128xf32>
      %92 = vector.broadcast %91 : vector<1x128xf32> to vector<8x128xf32>
      %93 = arith.addf %89, %92 : vector<8x128xf32>
      %cst_70 = arith.constant 0.000000e+00 : f32
      %94 = vector.broadcast %cst_70 : f32 to vector<8x128xf32>
      %95 = arith.maximumf %93, %94 : vector<8x128xf32>
      %c0_71 = arith.constant 0 : index
      %c0_72 = arith.constant 0 : index
      %96 = vector.load %arg26[%c0_71, %c0_72] : memref<8x128xf32, #tpu.memory_space<vmem>>, vector<8x128xf32>
      tpu.vector_store %arg26[%c0_71, %c0_72], %95 {strides = array<i32>} : memref<8x128xf32, #tpu.memory_space<vmem>>, vector<8x128xf32>,
    } else {
    }
    %63 = arith.extui %0 : i1 to i32
    %c0_i32_45 = arith.constant 0 : i32
    %64 = arith.cmpi ne, %63, %c0_i32_45 : i32
    scf.if %64 {
      %c0_46 = arith.constant 0 : index
      %c0_47 = arith.constant 0 : index
      %65 = vector.load %arg23[%c0_46, %c0_47] : memref<64x128xf32, #tpu.memory_space<vmem>>, vector<64x128xf32>
      tpu.vector_store %arg23[%c0_46, %c0_47], %58 {strides = array<i32>} : memref<64x128xf32, #tpu.memory_space<vmem>>, vector<64x128xf32>,
      %c0_48 = arith.constant 0 : index
      %c0_49 = arith.constant 0 : index
      %66 = vector.load %arg2[%c0_48, %c0_49] : memref<64x1xf32, #tpu.memory_space<vmem>>, vector<64x1xf32>
      %cst_50 = arith.constant 5.000000e-01 : f32
      %67 = vector.broadcast %cst_50 : f32 to vector<64x1xf32>
      %68 = arith.cmpf ogt, %66, %67 : vector<64x1xf32>
      %cst_51 = arith.constant -3.000000e+38 : f32
      %69 = vector.shape_cast %68 : vector<64x1xi1> to vector<64x1xi1>
      %70 = vector.broadcast %69 : vector<64x1xi1> to vector<64x128xi1>
      %71 = vector.broadcast %cst_51 : f32 to vector<64x128xf32>
      %72 = arith.select %70, %58, %71 : vector<64x128xi1>, vector<64x128xf32>
      %73 = vector.shape_cast %72 : vector<64x128xf32> to vector<8x8x128xf32>
      %cst_52 = arith.constant dense<0xFF800000> : vector<8x128xf32>
      %74 = vector.multi_reduction <maximumf>, %73, %cst_52 [1] : vector<8x8x128xf32> to vector<8x128xf32>
      %c0_53 = arith.constant 0 : index
      %c0_54 = arith.constant 0 : index
      %75 = vector.load %arg24[%c0_53, %c0_54] : memref<8x128xf32, #tpu.memory_space<vmem>>, vector<8x128xf32>
      tpu.vector_store %arg24[%c0_53, %c0_54], %74 {strides = array<i32>} : memref<8x128xf32, #tpu.memory_space<vmem>>, vector<8x128xf32>,
    } else {
    }
    return
  }
  func.func @transform_0(%arg0: i32) -> i32 {
    %c0_i32 = arith.constant 0 : i32
    %c0_i32_0 = arith.constant 0 : i32
    return %c0_i32 : i32
  }
  func.func @transform_1(%arg0: i32) -> (i32, i32) {
    %c0_i32 = arith.constant 0 : i32
    %c0_i32_0 = arith.constant 0 : i32
    %c0_i32_1 = arith.constant 0 : i32
    return %c0_i32, %c0_i32_0 : i32, i32
  }
  func.func @transform_2(%arg0: i32) -> (i32, i32) {
    %c0_i32 = arith.constant 0 : i32
    %c0_i32_0 = arith.constant 0 : i32
    %c0_i32_1 = arith.constant 0 : i32
    return %c0_i32, %c0_i32_0 : i32, i32
  }
  func.func @transform_3(%arg0: i32) -> (i32, i32) {
    %c0_i32 = arith.constant 0 : i32
    %c0_i32_0 = arith.constant 0 : i32
    %c0_i32_1 = arith.constant 0 : i32
    return %c0_i32, %c0_i32_0 : i32, i32
  }
  func.func @transform_4(%arg0: i32) -> (i32, i32) {
    %c0_i32 = arith.constant 0 : i32
    %c0_i32_0 = arith.constant 0 : i32
    %c0_i32_1 = arith.constant 0 : i32
    return %c0_i32, %c0_i32_0 : i32, i32
  }
  func.func @transform_5(%arg0: i32) -> (i32, i32) {
    %c0_i32 = arith.constant 0 : i32
    %c0_i32_0 = arith.constant 0 : i32
    %c0_i32_1 = arith.constant 0 : i32
    return %c0_i32, %c0_i32_0 : i32, i32
  }
  func.func @transform_6(%arg0: i32) -> (i32, i32) {
    %c0_i32 = arith.constant 0 : i32
    %c0_i32_0 = arith.constant 0 : i32
    %c0_i32_1 = arith.constant 0 : i32
    return %c0_i32, %c0_i32_0 : i32, i32
  }
  func.func @transform_7(%arg0: i32) -> (i32, i32) {
    %c0_i32 = arith.constant 0 : i32
    %c0_i32_0 = arith.constant 0 : i32
    %c0_i32_1 = arith.constant 0 : i32
    return %c0_i32, %c0_i32_0 : i32, i32
  }
  func.func @transform_8(%arg0: i32) -> (i32, i32) {
    %c0_i32 = arith.constant 0 : i32
    %c0_i32_0 = arith.constant 0 : i32
    %c0_i32_1 = arith.constant 0 : i32
    return %c0_i32, %c0_i32_0 : i32, i32
  }
  func.func @transform_9(%arg0: i32) -> (i32, i32, i32) {
    %c0_i32 = arith.constant 0 : i32
    %c0_i32_0 = arith.constant 0 : i32
    %c0_i32_1 = arith.constant 0 : i32
    return %arg0, %c0_i32, %c0_i32_0 : i32, i32, i32
  }
  func.func @transform_10(%arg0: i32) -> (i32, i32, i32) {
    %c0_i32 = arith.constant 0 : i32
    %c0_i32_0 = arith.constant 0 : i32
    %c0_i32_1 = arith.constant 0 : i32
    return %arg0, %c0_i32, %c0_i32_0 : i32, i32, i32
  }
  func.func @transform_11(%arg0: i32) -> (i32, i32, i32) {
    %c0_i32 = arith.constant 0 : i32
    %c0_i32_0 = arith.constant 0 : i32
    %c0_i32_1 = arith.constant 0 : i32
    return %arg0, %c0_i32, %c0_i32_0 : i32, i32, i32
  }
  func.func @transform_12(%arg0: i32) -> (i32, i32, i32) {
    %c0_i32 = arith.constant 0 : i32
    %c0_i32_0 = arith.constant 0 : i32
    %c0_i32_1 = arith.constant 0 : i32
    return %arg0, %c0_i32, %c0_i32_0 : i32, i32, i32
  }
  func.func @transform_13(%arg0: i32) -> (i32, i32, i32) {
    %c0_i32 = arith.constant 0 : i32
    %c0_i32_0 = arith.constant 0 : i32
    %c0_i32_1 = arith.constant 0 : i32
    return %arg0, %c0_i32, %c0_i32_0 : i32, i32, i32
  }
  func.func @transform_14(%arg0: i32) -> (i32, i32, i32) {
    %c0_i32 = arith.constant 0 : i32
    %c0_i32_0 = arith.constant 0 : i32
    %c0_i32_1 = arith.constant 0 : i32
    return %arg0, %c0_i32, %c0_i32_0 : i32, i32, i32
  }
  func.func @transform_15(%arg0: i32) -> (i32, i32, i32) {
    %c0_i32 = arith.constant 0 : i32
    %c0_i32_0 = arith.constant 0 : i32
    %c0_i32_1 = arith.constant 0 : i32
    return %arg0, %c0_i32, %c0_i32_0 : i32, i32, i32
  }
  func.func @transform_16(%arg0: i32) -> (i32, i32, i32) {
    %c0_i32 = arith.constant 0 : i32
    %c0_i32_0 = arith.constant 0 : i32
    %c0_i32_1 = arith.constant 0 : i32
    return %arg0, %c0_i32, %c0_i32_0 : i32, i32, i32
  }
  func.func @transform_17(%arg0: i32) -> (i32, i32, i32) {
    %c0_i32 = arith.constant 0 : i32
    %c0_i32_0 = arith.constant 0 : i32
    %c0_i32_1 = arith.constant 0 : i32
    return %arg0, %c0_i32, %c0_i32_0 : i32, i32, i32
  }
  func.func @transform_18(%arg0: i32) -> (i32, i32, i32) {
    %c0_i32 = arith.constant 0 : i32
    %c0_i32_0 = arith.constant 0 : i32
    %c0_i32_1 = arith.constant 0 : i32
    return %arg0, %c0_i32, %c0_i32_0 : i32, i32, i32
  }
  func.func @transform_19(%arg0: i32) -> (i32, i32, i32) {
    %c0_i32 = arith.constant 0 : i32
    %c0_i32_0 = arith.constant 0 : i32
    %c0_i32_1 = arith.constant 0 : i32
    return %arg0, %c0_i32, %c0_i32_0 : i32, i32, i32
  }
  func.func @transform_20(%arg0: i32) -> (i32, i32, i32) {
    %c0_i32 = arith.constant 0 : i32
    %c0_i32_0 = arith.constant 0 : i32
    %c0_i32_1 = arith.constant 0 : i32
    return %arg0, %c0_i32, %c0_i32_0 : i32, i32, i32
  }
  func.func @transform_21(%arg0: i32) -> (i32, i32, i32) {
    %c0_i32 = arith.constant 0 : i32
    %c0_i32_0 = arith.constant 0 : i32
    %c0_i32_1 = arith.constant 0 : i32
    return %arg0, %c0_i32, %c0_i32_0 : i32, i32, i32
  }
  func.func @transform_22(%arg0: i32) -> (i32, i32) {
    %c0_i32 = arith.constant 0 : i32
    %c0_i32_0 = arith.constant 0 : i32
    %c0_i32_1 = arith.constant 0 : i32
    return %c0_i32, %c0_i32_0 : i32, i32
  }
  func.func @transform_23(%arg0: i32) -> (i32, i32) {
    %c0_i32 = arith.constant 0 : i32
    %c0_i32_0 = arith.constant 0 : i32
    %c0_i32_1 = arith.constant 0 : i32
    return %c0_i32, %c0_i32_0 : i32, i32
  }
}

</mosaic_0001>

<bundles_post_ra>
// kernel: gnn_forward.1
= control target key start
LH: loop header
LB: loop body
LE: loop exit
PB: predicated region body
PF: predicated region fallthrough
CT: control target
= control target key end

     0   :  { %s3654_s0 = inlined_call_operand.vmem [shape: f32[2], index: 0, kind: input, shape index: {}]   ;;  %s3655_s1 = inlined_call_operand.vmem [shape: f32[64,1], index: 1, kind: input, shape index: {}]   ;;  %s3656_s2 = inlined_call_operand.vmem [shape: bf16[64,128], index: 2, kind: input, shape index: {}]   ;;  %s3657_s3 = inlined_call_operand.vmem [shape: bf16[128,128], index: 3, kind: input, shape index: {}]   ;;  %s3658_s4 = inlined_call_operand.vmem [shape: f32[1,128], index: 4, kind: input, shape index: {}]   ;;  %s3659_s5 = inlined_call_operand.vmem [shape: bf16[64,8], index: 5, kind: input, shape index: {}]   ;;  %s3660_s6 = inlined_call_operand.vmem [shape: bf16[32,64], index: 6, kind: input, shape index: {}]   ;;  %s3661_s7 = inlined_call_operand.vmem [shape: bf16[32,64], index: 7, kind: input, shape index: {}]   ;;  %s3662_s8 = inlined_call_operand.vmem [shape: bf16[32,128], index: 8, kind: input, shape index: {}]   ;;  %s3663_s9 = inlined_call_operand.vmem [shape: bf16[2,128,128], index: 9, kind: input, shape index: {}]   ;;  %s3664_s10 = inlined_call_operand.vmem [shape: bf16[2,128,128], index: 10, kind: input, shape index: {}]   ;;  %s3665_s11 = inlined_call_operand.vmem [shape: f32[2,1,128], index: 11, kind: input, shape index: {}]   ;;  %s3666_s12 = inlined_call_operand.vmem [shape: f32[2,1,128], index: 12, kind: input, shape index: {}]   ;;  %s3667_s13 = inlined_call_operand.vmem [shape: bf16[2,128,128], index: 13, kind: input, shape index: {}]   ;;  %s3668_s14 = inlined_call_operand.vmem [shape: f32[2,1,128], index: 14, kind: input, shape index: {}]   ;;  %s3669_s15 = inlined_call_operand.vmem [shape: f32[2,1,128], index: 15, kind: input, shape index: {}]   ;;  %s3670_s16 = inlined_call_operand.vmem [shape: bf16[2,128,128], index: 16, kind: input, shape index: {}]   ;;  %s3671_s17 = inlined_call_operand.vmem [shape: f32[2,1,128], index: 17, kind: input, shape index: {}]   ;;  %s3672_s18 = inlined_call_operand.vmem [shape: f32[2,1,128], index: 18, kind: input, shape index: {}]   ;;  %s3673_s19 = inlined_call_operand.vmem [shape: bf16[2,128,128], index: 19, kind: input, shape index: {}]   ;;  %s3674_s20 = inlined_call_operand.vmem [shape: f32[2,1,128], index: 20, kind: input, shape index: {}]   ;;  %s3675_s21 = inlined_call_operand.vmem [shape: f32[2,1,128], index: 21, kind: input, shape index: {}]   ;;  %s3676_s22 = inlined_call_operand.vmem [shape: f32[64,128], index: 22, kind: output, shape index: {0}]   ;;  %s3677_s23 = inlined_call_operand.vmem [shape: f32[8,128], index: 23, kind: output, shape index: {1}]  }
   0x1   :  { %3687 = sst [smem:[#allocation8_spill]] %s3654_s0 }
   0x2   :  { %3688 = sst [smem:[#allocation9_spill]] %s3655_s1 }
   0x3   :  { %3689 = sst [smem:[#allocation10_spill]] %s3656_s2 }
   0x4   :  { %3690 = sst [smem:[#allocation11_spill]] %s3657_s3 }
   0x5   :  { %3691 = sst [smem:[#allocation12_spill]] %s3658_s4 }
   0x6   :  { %3692 = sst [smem:[#allocation13_spill]] %s3659_s5 }
   0x7   :  { %3693 = sst [smem:[#allocation14_spill]] %s3660_s6 }
   0x8   :  { %3694 = sst [smem:[#allocation15_spill]] %s3661_s7 }
   0x9   :  { %3695 = sst [smem:[#allocation16_spill]] %s3662_s8 }
   0xa   :  { %3696 = sst [smem:[#allocation17_spill]] %s3663_s9 }
   0xb   :  { %3697 = sst [smem:[#allocation18_spill]] %s3664_s10 }
   0xc   :  { %3698 = sst [smem:[#allocation19_spill]] %s3666_s12 }
   0xd   :  { %3699 = sst [smem:[#allocation20_spill]] %s3667_s13 }
   0xe   :  { %3700 = sst [smem:[#allocation21_spill]] %s3676_s22 }
   0xf   :  { %3701 = sst [smem:[#allocation22_spill]] %s3677_s23 }
  0x10   :  { %29 = vsyncpa [#allocation5], 0  ;;  %s3176_s4 = smov 0  }
  0x11 LB: > { %3702 = sst [smem:[#allocation7_spill]] %s3050_s4  ;;  %s3182_s30 = sadd.s32 4294967295, %s3050_s4   ;;  %s3050_s4 = sphi %s3176_s4, %s35_s4  }
  0x12   : > { %p2545_p0 = scmp.ge.s32.totalorder %s3050_s4, 1  ;;  %p609_p1 = scmp.lt.s32.totalorder %s3050_s4, 3 }
  0x13   : > { %s3703_s5 = sld [smem:[#allocation8_spill]]  ;;  %p2945_p4 = scmp.eq.s32.totalorder %s3182_s30, 0 }
  0x14   : > { %p3190_p3 = pnand %p2545_p0, %p609_p1 }
  0x16   : > { %p2941_p5 = pneg %p3190_p3 }
  0x18   : > { %p2942_p6 = pnand %p2945_p4, %p2941_p5 }
  0x19   : > { %s622_s1 = sshll.u32 %s3703_s5, 4  ;;  %s623_s1 = int_to_ptr.vmem [resolvable:$true] %s622_s1 }
  0x1a   : > { %s3025_s2 = scalar_lea.vmem %s623_s1, 16  ;;  %p3027_p8 = pneg %p2942_p6 }
  0x1b   : > { %p3026_p7 = scmp.ne.s32.totalorder %s623_s1, %s3025_s2  ;;  %p3033_p11 = scmp.lt.s32.totalorder %s623_s1, %s623_s1 }
  0x1c   : > { %p3034_p12 = scmp.lt.s32.totalorder %s3025_s2, %s3025_s2 }
  0x1d   : > { %p3028_p9 = pnand %p3027_p8, %p3026_p7 }
  0x1e   : > { %p3035_p13 = por %p3034_p12, %p3033_p11 }
  0x1f   : > { %p3029_p10 = pneg %p3028_p9 }
  0x21   : > { %p3036_p2 = pnand %p3035_p13, %p3029_p10 }
  0x23   : > { %3039 = shalt.err (!%p3036_p2)
}
  0x24   : > { %s3052_s6 = smov [#allocation4]   ;;  %747 = sbr.rel (%p3190_p3) target bundleno = 2290 (0x8f2), region = 108 }
  0x25   : > { %2944 = dma.vmem_to_smem (!%p2942_p6), %s623_s1, 16, %s3052_s6, [#allocation5]  }
  0x2b   : > { %3045 = dma.done.wait (%p2945_p4), [#allocation5], 16  }
  0x2c   : > { %3047 = vsyncadd (%p2945_p4), [#allocation5], 4294967280 }
  0x2d   : > { %753 = sfence }
  0x2e   : > { %p851_p0 = scmp.lt.s32.totalorder %s3182_s30, 1  ;;  %p901_p1 = scmp.eq.s32.totalorder %s3182_s30, 1 }
  0x2f   : > { %s3705_s9 = sld [smem:[#allocation17_spill]]  ;;  %s3706_s10 = sld [smem:[#allocation18_spill]] }
  0x30   : > { %s3208_s27 = scalar_select %p851_p0, %s3182_s30, 1 }
  0x31   : > { %s3708_s13 = sld [smem:[#allocation20_spill]]  ;;  %p3709_p2 = scmp.ne.s32.totalorder %s3182_s30, 0 }
  0x32   : > { %s2647_s7 = sshll.u32 %s3208_s27, 6  ;;  %s885_s4 = scalar_lea.vmem %s3671_s17, %s3208_s27 }
  0x33   : > { %s3258_s29 = scalar_lea.vmem %s3673_s19, %s2647_s7  ;;  %905 = sbr.rel (%p3709_p2) target bundleno = 307 (0x133), region = 116 }
  0x34   : > { %s3710_s22 = sld [smem:[#allocation11_spill]] (!%p3709_p2)  ;;  %s3711_s5 = sld [smem:[#allocation10_spill]] (!%p3709_p2) }
  0x35   : > { %s3218_s25 = scalar_lea.vmem %s3705_s9, %s2647_s7  ;;  %s3223_s26 = scalar_lea.vmem %s3706_s10, %s2647_s7 }
  0x36   : > { %s3245_s10 = scalar_lea.vmem %s3670_s16, %s2647_s7  ;;  %s896_s9 = scalar_lea.vmem %s3674_s20, %s3208_s27 }
  0x37   : > { %s3232_s8 = scalar_lea.vmem %s3708_s13, %s2647_s7  ;;  %s3712_s28 = sld [smem:[#allocation12_spill]] (!%p3709_p2) }
  0x3a   : > { %v2961_v0 = vld [vmem:[%s3710_s22] sm:$0xff]   ;;  %v2962_v1 = vld [vmem:[%s3710_s22 + $0x8] sm:$0xff]   ;;  %v2963_v2 = vld [vmem:[%s3710_s22 + $0x10] sm:$0xff]  }
  0x3b   : > { %2738 = vmatprep.subr.bf16.mxu0 %v2961_v0  ;;  %2916 = vmatprep.subr.bf16.mxu1 %v2961_v0  ;;  %v2964_v3 = vld [vmem:[%s3710_s22 + $0x18] sm:$0xff]   ;;  %v2969_v4 = vld [vmem:[%s3711_s5] sm:$0xff]   ;;  %v2970_v5 = vld [vmem:[%s3711_s5 + $0x10] sm:$0xff]  }
  0x3c   : > { %2739 = vmatpush3.bf16.msra.mxu0 %v2961_v0  ;;  %2924 = vmatpush3.bf16.msra.mxu1 %v2961_v0  ;;  %v2965_v6 = vld [vmem:[%s3710_s22 + $0x20] sm:$0xff]   ;;  %v2966_v7 = vld [vmem:[%s3710_s22 + $0x28] sm:$0xff]   ;;  %v2967_v8 = vld [vmem:[%s3710_s22 + $0x30] sm:$0xff]  }
  0x3d   : > { %2740 = vmatprep.subr.bf16.mxu0 %v2962_v1  ;;  %2917 = vmatprep.subr.bf16.mxu1 %v2962_v1  ;;  %v2968_v9 = vld [vmem:[%s3710_s22 + $0x38] sm:$0xff]   ;;  %v2971_v10 = vld [vmem:[%s3711_s5 + $0x8] sm:$0xff]   ;;  %v2573_v12 = vld [vmem:[%s3712_s28] ss:$0 sm:$0xff] }
  0x3e   : > { %2754 = vmatprep.mubr.bf16.mxu0 %v2969_v4  ;;  %2758 = vmatprep.mubr.bf16.mxu1 %v2970_v5  ;;  %v2972_v11 = vld [vmem:[%s3711_s5 + $0x18] sm:$0xff]   ;;  %1082 = vst [vmem:[#allocation3] sm:$0xff] %v2573_v12 }
  0x40   : > { %2741 = vmatpush3.bf16.msra.mxu0 %v2962_v1  ;;  %2925 = vmatpush3.bf16.msra.mxu1 %v2962_v1 }
  0x41   : > { %2742 = vmatprep.subr.bf16.mxu0 %v2963_v2  ;;  %2918 = vmatprep.subr.bf16.mxu1 %v2963_v2 }
  0x44   : > { %2743 = vmatpush3.bf16.msra.mxu0 %v2963_v2  ;;  %2926 = vmatpush3.bf16.msra.mxu1 %v2963_v2 }
  0x45   : > { %2744 = vmatprep.subr.bf16.mxu0 %v2964_v3  ;;  %2919 = vmatprep.subr.bf16.mxu1 %v2964_v3 }
  0x48   : > { %2745 = vmatpush3.bf16.msra.mxu0 %v2964_v3  ;;  %2927 = vmatpush3.bf16.msra.mxu1 %v2964_v3 }
  0x49   : > { %2746 = vmatprep.subr.bf16.mxu0 %v2965_v6  ;;  %2920 = vmatprep.subr.bf16.mxu1 %v2965_v6 }
  0x4c   : > { %2747 = vmatpush3.bf16.msra.mxu0 %v2965_v6  ;;  %2928 = vmatpush3.bf16.msra.mxu1 %v2965_v6 }
  0x4d   : > { %2748 = vmatprep.subr.bf16.mxu0 %v2966_v7  ;;  %2921 = vmatprep.subr.bf16.mxu1 %v2966_v7 }
  0x50   : > { %2749 = vmatpush3.bf16.msra.mxu0 %v2966_v7  ;;  %2929 = vmatpush3.bf16.msra.mxu1 %v2966_v7 }
  0x51   : > { %2750 = vmatprep.subr.bf16.mxu0 %v2967_v8  ;;  %2922 = vmatprep.subr.bf16.mxu1 %v2967_v8 }
  0x54   : > { %2751 = vmatpush3.bf16.msra.mxu0 %v2967_v8  ;;  %2930 = vmatpush3.bf16.msra.mxu1 %v2967_v8 }
  0x55   : > { %2752 = vmatprep.subr.bf16.mxu0 %v2968_v9  ;;  %2923 = vmatprep.subr.bf16.mxu1 %v2968_v9 }
  0x58   : > { %2753 = vmatpush3.bf16.msra.mxu0 %v2968_v9  ;;  %2931 = vmatpush3.bf16.msra.mxu1 %v2968_v9 }
  0x5b   : > { %2755 = vmatmul.mubr.bf16.vlgmr.msra.gmra.mrb[0].mxu0 %v2971_v10  ;;  %2759 = vmatmul.mubr.bf16.vlgmr.msra.gmra.mrb[0].mxu1 %v2972_v11 }
 0x12e   : > { %v2756_v13 = vpop.f32.mrb[0].mxu0  ;;  %v2760_v14 = vpop.f32.mrb[0].mxu1 }
 0x12f   : > { %1069 = vst [vmem:[#allocation2 + $0x10] sm:$0xff] %v2756_v13  ;;  %1073 = vst [vmem:[#allocation2 + $0x30] sm:$0xff] %v2760_v14  ;;  %v1036_v15 = vpop.f32.mrb[1].mxu0  ;;  %v1052_v16 = vpop.f32.mrb[1].mxu1 }
 0x130   : > { %1067 = vst [vmem:[#allocation2] sm:$0xff] %v1036_v15  ;;  %1071 = vst [vmem:[#allocation2 + $0x20] sm:$0xff] %v1052_v16  ;;  %v2757_v17 = vpop.f32.mrb[2].mxu0  ;;  %v2761_v18 = vpop.f32.mrb[2].mxu1 }
 0x131   : > { %1070 = vst [vmem:[#allocation2 + $0x18] sm:$0xff] %v2757_v17  ;;  %1074 = vst [vmem:[#allocation2 + $0x38] sm:$0xff] %v2761_v18  ;;  %v1039_v19 = vpop.f32.mrb[3].mxu0  ;;  %v1055_v20 = vpop.f32.mrb[3].mxu1 }
 0x132   : > { %1068 = vst [vmem:[#allocation2 + $0x8] sm:$0xff] %v1039_v19  ;;  %1072 = vst [vmem:[#allocation2 + $0x28] sm:$0xff] %v1055_v20 }
 0x133 PF: > { %v1099_v21 = vld [vmem:[#allocation3] sm:$0xff]  ;;  %vm1134_vm0 = vcmask 1043456   ;;  %s3713_s24 = sld [smem:[#allocation13_spill]]  ;;  %vm1121_vm1 = vcmask 64512   ;;  %v2978_v28 = vld [vmem:[%s3218_s25 + $0x8] sm:$0xff]   ;;  %v2979_v29 = vld [vmem:[%s3218_s25 + $0x10] sm:$0xff]   ;;  %s3717_s7 = scalar_lea.vmem %s3665_s11, %s3208_s27 }
 0x134   : > { %v1100_v22 = vpack.c.bf16 %v1099_v21, %v1099_v21  ;;  %v2977_v27 = vld [vmem:[%s3218_s25] sm:$0xff]   ;;  %v2980_v31 = vld [vmem:[%s3218_s25 + $0x18] sm:$0xff]   ;;  %v2982_v33 = vld [vmem:[%s3218_s25 + $0x28] sm:$0xff]   ;;  %s3714_s13 = sld [smem:[#allocation16_spill]]  ;;  %s3715_s12 = sld [smem:[#allocation14_spill]]  ;;  %vm1358_vm2 = vcmask 523264  }
 0x135   : > { %2772 = vmatprep.subr.bf16.mxu1 %v2977_v27  ;;  %v2981_v32 = vld [vmem:[%s3218_s25 + $0x20] sm:$0xff]   ;;  %v2983_v34 = vld [vmem:[%s3218_s25 + $0x30] sm:$0xff]   ;;  %v2984_v35 = vld [vmem:[%s3218_s25 + $0x38] sm:$0xff]   ;;  %s3716_s0 = sld [smem:[#allocation15_spill]]  ;;  %vm1452_vm3 = vcmask 261120   ;;  %s3718_s1 = sld [smem:[#allocation19_spill]] }
 0x136   : > { %2936 = vmatprep.subr.msk.bf16.mxu0 %vm1134_vm0, %v1100_v22  ;;  %v1136_v24 = vsel %vm1134_vm0, %v1100_v22, 0  ;;  %2773 = vmatpush3.bf16.msra.mxu1 %v2977_v27  ;;  %v1093_v47 = vld [vmem:[#allocation2 + $0x10] sm:$0xff]  ;;  %s1530_s6 = sld [smem:[#allocation4 + %s3182_s30]]  ;;  %s3720_s23 = scalar_lea.vmem %s3668_s14, %s3208_s27  ;;  %vm3054_vm5 = vmmov (!%p901_p1), 0  }
 0x137   : > { %2763 = vmatpush3.bf16.msra.mxu0 %v1136_v24  ;;  %2774 = vmatprep.subr.bf16.mxu1 %v2978_v28  ;;  %v1091_v42 = vld [vmem:[#allocation2] sm:$0xff]  ;;  %v1097_v61 = vld [vmem:[#allocation2 + $0x30] sm:$0xff]  ;;  %s3721_s28 = scalar_lea.vmem %s3669_s15, %s3208_s27 }
 0x138   : > { %v1094_v44 = vld [vmem:[#allocation2 + $0x18] sm:$0xff]  ;;  %v1095_v56 = vld [vmem:[#allocation2 + $0x20] sm:$0xff] }
 0x139   : > { %v3312_v23 = vld [vmem:[%s3713_s24] sm:$0xff]   ;;  %v3319_v25 = vld [vmem:[%s3713_s24 + $0x8] sm:$0xff]   ;;  %v3324_v26 = vld [vmem:[%s3713_s24 + $0x10] sm:$0xff]  }
 0x13a   : > { %2764 = vmatprep.mubr.msk.bf16.mxu0 %vm1121_vm1, %v3312_v23  ;;  %v3336_v30 = vld [vmem:[%s3713_s24 + $0x18] sm:$0xff]   ;;  %2775 = vmatpush3.bf16.msra.mxu1 %v2978_v28  ;;  %v2985_v36 = vld [vmem:[%s3714_s13] sm:$0xff]   ;;  %v2986_v37 = vld [vmem:[%s3714_s13 + $0x8] sm:$0xff]  }
 0x13b   : > { %2765 = vmatmul.mubr.msk.bf16.vlgmr.msra.gmra.mrb[0].mxu0 %vm1121_vm1, %v3319_v25  ;;  %2776 = vmatprep.subr.bf16.mxu1 %v2979_v29  ;;  %v2987_v38 = vld [vmem:[%s3715_s12] sm:$0xff]   ;;  %v2990_v40 = vld [vmem:[%s3716_s0 + $0x8] sm:$0xff]   ;;  %v1098_v58 = vld [vmem:[#allocation2 + $0x38] sm:$0xff]  ;;  %s3719_s2 = scalar_lea.vmem %s3718_s1, %s3208_s27 }
 0x13c   : > { %2768 = vmatprep.mubr.msk.bf16.mxu0 %vm1121_vm1, %v3324_v26  ;;  %2788 = vmatprep.mubr.bf16.mxu1 %v2985_v36  ;;  %v2989_v39 = vld [vmem:[%s3716_s0] sm:$0xff]   ;;  %v1092_v45 = vld [vmem:[#allocation2 + $0x8] sm:$0xff] }
 0x13d   : > { %1436 = vxpose.xlu0.c.b16.start [1/2] (short) (narrow) %v2989_v39, 64  ;;  %v1096_v59 = vld [vmem:[#allocation2 + $0x28] sm:$0xff]  ;;  %v2995_v36 = vld [vmem:[%s3223_s26 + $0x20] sm:$0xff]   ;;  %v2998_v39 = vld [vmem:[%s3223_s26 + $0x38] sm:$0xff]  }
 0x13e   : > { %2777 = vmatpush3.bf16.msra.mxu1 %v2979_v29  ;;  %v2988_v5 = vld [vmem:[%s3715_s12 + $0x8] sm:$0xff]   ;;  %v2991_v29 = vld [vmem:[%s3223_s26] sm:$0xff]  }
 0x13f   : > { %2778 = vmatprep.subr.bf16.mxu1 %v2980_v31 }
 0x141   : > { %1437 = vxpose.xlu0.c.b16.end [2/2] (short) (narrow) %v2990_v40, 64  ;;  %v2999_v40 = vld [vmem:[%s3232_s8] sm:$0xff]  }
 0x142   : > { %2779 = vmatpush3.bf16.msra.mxu1 %v2980_v31 }
 0x143   : > { %2769 = vmatmul.mubr.msk.bf16.gmra.mrb[4].mxu0 %vm1121_vm1, %v3336_v30  ;;  %2780 = vmatprep.subr.bf16.mxu1 %v2981_v32 }
 0x144   : > { %2800 = vmatprep.mubr.msk.bf16.mxu0 %vm1358_vm2, %v2987_v38  ;;  %v2997_v38 = vld [vmem:[%s3223_s26 + $0x30] sm:$0xff]  }
 0x146   : > { %2781 = vmatpush3.bf16.msra.mxu1 %v2981_v32  ;;  %v2992_v32 = vld [vmem:[%s3223_s26 + $0x8] sm:$0xff]  }
 0x147   : > { %2782 = vmatprep.subr.bf16.mxu1 %v2982_v33 }
 0x14a   : > { %2783 = vmatpush3.bf16.msra.mxu1 %v2982_v33  ;;  %v2993_v33 = vld [vmem:[%s3223_s26 + $0x10] sm:$0xff]   ;;  %1927 = vxpose.xlu0.c.b16.start [1/4] (short) (narrow) (!%p901_p1), %v3312_v23, 16 }
 0x14b   : > { %2784 = vmatprep.subr.bf16.mxu1 %v2983_v34  ;;  %v3009_v23 = vld [vmem:[%s3245_s10 + $0x10] sm:$0xff] (!%p901_p1)  }
 0x14e   : > { %2785 = vmatpush3.bf16.msra.mxu1 %v2983_v34  ;;  %1928 = vxpose.xlu0.c.b16.cont [2/4] (short) (narrow) (!%p901_p1), %v3319_v25, 16  ;;  %v3011_v25 = vld [vmem:[%s3245_s10 + $0x20] sm:$0xff] (!%p901_p1)  }
 0x14f   : > { %2786 = vmatprep.subr.bf16.mxu1 %v2984_v35 }
 0x152   : > { %2787 = vmatpush3.bf16.msra.mxu1 %v2984_v35  ;;  %v2994_v35 = vld [vmem:[%s3223_s26 + $0x18] sm:$0xff]   ;;  %1929 = vxpose.xlu0.c.b16.cont [3/4] (short) (narrow) (!%p901_p1), %v3324_v26, 16  ;;  %v3012_v26 = vld [vmem:[%s3245_s10 + $0x28] sm:$0xff] (!%p901_p1)  }
 0x153   : > { %2840 = vmatprep.subr.bf16.mxu1 %v2999_v40 }
 0x155   : > { %2789 = vmatmul.mubr.bf16.vlgmr.msra.gmra.mrb[0].mxu1 %v2986_v37  ;;  %v2996_v37 = vld [vmem:[%s3223_s26 + $0x28] sm:$0xff]   ;;  %s1531_s26 = sadd.f32 1.0, %s1530_s6 }
 0x156   : > { %2841 = vmatpush3.bf16.msra.mxu1 %v2999_v40  ;;  %1930 = vxpose.xlu0.c.b16.end [4/4] (short) (narrow) (!%p901_p1), %v3336_v30, 16  ;;  %v3013_v30 = vld [vmem:[%s3245_s10 + $0x30] sm:$0xff] (!%p901_p1)  }
 0x1a3   : > { %v1444_v10 = vpop.trf.xlu0 }
 0x1a7   : > { %v1445_v28 = vpop.trf.xlu0 }
 0x1ab   : > { %v1446_v31 = vpop.trf.xlu0 }
 0x1af   : > { %v1447_v34 = vpop.trf.xlu0 }
 0x20e   : > { %v2766_v41 = vpop.f32.mrb[0].mxu0 }
 0x20f   : > { %v1172_v43 = vpop.f32.mrb[1].mxu0  ;;  %v3367_v52 = vadd.f32 %v2766_v41, %v1093_v47  ;;  %v3000_v41 = vld [vmem:[%s3232_s8 + $0x8] sm:$0xff]  }
 0x210   : > { %v2767_v46 = vpop.f32.mrb[2].mxu0  ;;  %v3361_v49 = vadd.f32 %v1172_v43, %v1091_v42  ;;  %2842 = vmatprep.subr.bf16.mxu1 %v3000_v41  ;;  %v3001_v42 = vld [vmem:[%s3232_s8 + $0x10] sm:$0xff]   ;;  %v3002_v43 = vld [vmem:[%s3232_s8 + $0x18] sm:$0xff]  }
 0x211   : > { %v1175_v48 = vpop.f32.mrb[3].mxu0  ;;  %v3363_v50 = vadd.f32 %v2767_v46, %v1094_v44  ;;  %2843 = vmatpush3.bf16.msra.mxu1 %v3000_v41  ;;  %v3003_v44 = vld [vmem:[%s3232_s8 + $0x20] sm:$0xff]  }
 0x212   : > { %v3365_v51 = vadd.f32 %v1175_v48, %v1092_v45  ;;  %2844 = vmatprep.subr.bf16.mxu1 %v3001_v42  ;;  %v1532_v45 = vstv %s1531_s26 }
 0x213   : > { %v3376_v55 = vpack.c.bf16 %v3363_v50, %v3367_v52  ;;  %v1535_v47 = vmul.f32 %v1532_v45, %v3367_v52 }
 0x214   : > { %v3371_v53 = vpack.c.bf16 %v3365_v51, %v3361_v49 }
 0x215   : > { %2845 = vmatpush3.bf16.msra.mxu1 %v3001_v42 }
 0x216   : > { %v2770_v54 = vpop.f32.mrb[4].mxu0  ;;  %2792 = vmatprep.subr.bf16.mxu0 %v3371_v53  ;;  %2846 = vmatprep.subr.bf16.mxu1 %v3002_v43 }
 0x217   : > { %v1188_v57 = vpop.f32.mrb[5].mxu0  ;;  %2793 = vmatpush3.bf16.msra.mxu0 %v3371_v53  ;;  %v3387_v2 = vadd.f32 %v2770_v54, %v1097_v61  ;;  %v1536_v54 = vmul.f32 %v1532_v45, %v3363_v50 }
 0x218   : > { %v2771_v60 = vpop.f32.mrb[6].mxu0  ;;  %2794 = vmatprep.subr.bf16.mxu0 %v3376_v55  ;;  %v3380_v63 = vadd.f32 %v1188_v57, %v1095_v56  ;;  %v1533_v56 = vmul.f32 %v1532_v45, %v3361_v49 }
 0x219   : > { %v1191_v62 = vpop.f32.mrb[7].mxu0  ;;  %v3382_v0 = vadd.f32 %v2771_v60, %v1098_v58  ;;  %2847 = vmatpush3.bf16.msra.mxu1 %v3002_v43  ;;  %v1534_v58 = vmul.f32 %v1532_v45, %v3365_v51 }
 0x21a   : > { %v3384_v1 = vadd.f32 %v1191_v62, %v1096_v59  ;;  %2848 = vmatprep.subr.bf16.mxu1 %v3003_v44 }
 0x21b   : > { %2795 = vmatpush3.bf16.msra.mxu0 %v3376_v55  ;;  %v3396_v4 = vpack.c.bf16 %v3382_v0, %v3387_v2 }
 0x21c   : > { %v3391_v3 = vpack.c.bf16 %v3384_v1, %v3380_v63 }
 0x21d   : > { %2849 = vmatpush3.bf16.msra.mxu1 %v3003_v44 }
 0x21e   : > { %2796 = vmatprep.subr.bf16.mxu0 %v3391_v3 }
 0x21f   : > { %2797 = vmatpush3.bf16.msra.mxu0 %v3391_v3 }
 0x220   : > { %2798 = vmatprep.subr.bf16.mxu0 %v3396_v4 }
 0x223   : > { %2799 = vmatpush3.bf16.msra.mxu0 %v3396_v4 }
 0x226   : > { %2801 = vmatmul.mubr.msk.bf16.vlgmr.msra.gmra.mrb[8].mxu0 %vm1358_vm2, %v2988_v5 }
 0x227   : > { %2808 = vmatprep.mubr.msk.bf16.mxu0 %vm1452_vm3, %v1444_v10 }
 0x228   : > { %v2790_v6 = vpop.f32.mrb[0].mxu1 }
 0x229   : > { %v1329_v7 = vpop.f32.mrb[1].mxu1 }
 0x22a   : > { %v2791_v8 = vpop.f32.mrb[2].mxu1 }
 0x22b   : > { %v1332_v9 = vpop.f32.mrb[3].mxu1 }
 0x2f9   : > { %v2802_v11 = vpop.f32.mrb[8].mxu0 }
 0x2fa   : > { %v1408_v12 = vadd.f32 %v2802_v11, %v2790_v6  ;;  %v1399_v13 = vpop.f32.mrb[9].mxu0  ;;  %v1540_v11 = vmul.f32 %v1532_v45, %v3382_v0 }
 0x2fb   : > { %v1400_v14 = vadd.f32 %v1399_v13, %v1329_v7  ;;  %v2803_v15 = vpop.f32.mrb[10].mxu0 }
 0x2fc   : > { %v1411_v16 = vadd.f32 %v2803_v15, %v2791_v8  ;;  %v1402_v17 = vpop.f32.mrb[11].mxu0  ;;  %v1416_v19 = vmax.f32 %v1408_v12, 0.0  ;;  %v1537_v12 = vmul.f32 %v1532_v45, %v3380_v63 }
 0x2fd   : > { %v1403_v18 = vadd.f32 %v1402_v17, %v1332_v9  ;;  %v1414_v21 = vmax.f32 %v1400_v14, 0.0  ;;  %v1539_v9 = vmul.f32 %v1532_v45, %v3387_v2  ;;  %v1538_v14 = vmul.f32 %v1532_v45, %v3384_v1 }
 0x2fe   : > { %v1417_v20 = vmax.f32 %v1411_v16, 0.0 }
 0x2ff   : > { %v1415_v22 = vmax.f32 %v1403_v18, 0.0 }
 0x300   : > { %v1419_v24 = vpack.c.bf16 %v1417_v20, %v1416_v19 }
 0x301   : > { %v1418_v27 = vpack.c.bf16 %v1415_v22, %v1414_v21  ;;  %v3004_v22 = vld [vmem:[%s3232_s8 + $0x28] sm:$0xff]  }
 0x302   : > { %2850 = vmatprep.subr.bf16.mxu1 %v3004_v22 }
 0x303   : > { %2804 = vmatprep.subr.bf16.mxu0 %v1418_v27  ;;  %2851 = vmatpush3.bf16.msra.mxu1 %v3004_v22 }
 0x304   : > { %2805 = vmatpush3.bf16.msra.mxu0 %v1418_v27  ;;  %v3006_v27 = vld [vmem:[%s3232_s8 + $0x38] sm:$0xff]  }
 0x305   : > { %2806 = vmatprep.subr.bf16.mxu0 %v1419_v24 }
 0x308   : > { %2807 = vmatpush3.bf16.msra.mxu0 %v1419_v24  ;;  %v3005_v24 = vld [vmem:[%s3232_s8 + $0x30] sm:$0xff]   ;;  %s1891_s8 = scalar_select %p901_p1, 1, 0 }
 0x309   : > { %2816 = vmatprep.subr.bf16.mxu0 %v2991_v29  ;;  %2852 = vmatprep.subr.bf16.mxu1 %v3005_v24 }
 0x30a   : > { %2853 = vmatpush3.bf16.msra.mxu1 %v3005_v24 }
 0x30b   : > { %2809 = vmatmul.mubr.msk.bf16.vlgmr.msra.gmra.mrb[12].mxu0 %vm1452_vm3, %v1445_v28  ;;  %2854 = vmatprep.subr.bf16.mxu1 %v3006_v27  ;;  %v2610_v28 = vld [vmem:[%s3717_s7] ss:$0 sm:$0xff] }
 0x30c   : > { %2812 = vmatprep.mubr.msk.bf16.mxu0 %vm1452_vm3, %v1446_v31  ;;  %2817 = vmatpush3.bf16.msra.mxu0 %v2991_v29  ;;  %v2611_v31 = vld [vmem:[%s3719_s2] ss:$0 sm:$0xff] }
 0x30d   : > { %2818 = vmatprep.subr.bf16.mxu0 %v2992_v32 }
 0x30e   : > { %2855 = vmatpush3.bf16.msra.mxu1 %v3006_v27 }
 0x310   : > { %2819 = vmatpush3.bf16.msra.mxu0 %v2992_v32 }
 0x311   : > { %2820 = vmatprep.subr.bf16.mxu0 %v2993_v33 }
 0x313   : > { %2813 = vmatmul.mubr.msk.bf16.gmra.mrb[16].mxu0 %vm1452_vm3, %v1447_v34 }
 0x314   : > { %2821 = vmatpush3.bf16.msra.mxu0 %v2993_v33 }
 0x315   : > { %2822 = vmatprep.subr.bf16.mxu0 %v2994_v35 }
 0x318   : > { %2823 = vmatpush3.bf16.msra.mxu0 %v2994_v35 }
 0x319   : > { %2824 = vmatprep.subr.bf16.mxu0 %v2995_v36 }
 0x31c   : > { %2825 = vmatpush3.bf16.msra.mxu0 %v2995_v36 }
 0x31d   : > { %2826 = vmatprep.subr.bf16.mxu0 %v2996_v37 }
 0x320   : > { %2827 = vmatpush3.bf16.msra.mxu0 %v2996_v37 }
 0x321   : > { %2828 = vmatprep.subr.bf16.mxu0 %v2997_v38 }
 0x324   : > { %2829 = vmatpush3.bf16.msra.mxu0 %v2997_v38 }
 0x325   : > { %2830 = vmatprep.subr.bf16.mxu0 %v2998_v39 }
 0x328   : > { %2831 = vmatpush3.bf16.msra.mxu0 %v2998_v39 }
 0x3de   : > { %v2810_v46 = vpop.f32.mrb[12].mxu0 }
 0x3df   : > { %v1499_v48 = vpop.f32.mrb[13].mxu0  ;;  %v1543_v59 = vadd.f32 %v2810_v46, %v1535_v47 }
 0x3e0   : > { %v2811_v57 = vpop.f32.mrb[14].mxu0  ;;  %v1541_v62 = vadd.f32 %v1533_v56, %v1499_v48 }
 0x3e1   : > { %v1544_v60 = vadd.f32 %v2811_v57, %v1536_v54  ;;  %v1502_v61 = vpop.f32.mrb[15].mxu0 }
 0x3e2   : > { %v1542_v5 = vadd.f32 %v1534_v58, %v1502_v61 }
 0x3e3   : > { %v1550_v6 = vpack.c.bf16 %v1544_v60, %v1543_v59 }
 0x3e4   : > { %v1549_v7 = vpack.c.bf16 %v1542_v5, %v1541_v62 }
 0x3e6   : > { %v2814_v8 = vpop.f32.mrb[16].mxu0  ;;  %2832 = vmatprep.mubr.bf16.mxu0 %v1549_v7 }
 0x3e7   : > { %v1515_v10 = vpop.f32.mrb[17].mxu0  ;;  %2833 = vmatmul.mubr.bf16.vlgmr.msra.gmra.mrb[20].mxu0 %v1550_v6  ;;  %v1547_v15 = vadd.f32 %v2814_v8, %v1539_v9 }
 0x3e8   : > { %v2815_v13 = vpop.f32.mrb[18].mxu0  ;;  %v1545_v18 = vadd.f32 %v1537_v12, %v1515_v10 }
 0x3e9   : > { %v1548_v16 = vadd.f32 %v2815_v13, %v1540_v11  ;;  %v1518_v17 = vpop.f32.mrb[19].mxu0 }
 0x3ea   : > { %v1546_v19 = vadd.f32 %v1538_v14, %v1518_v17  ;;  %v2621_v17 = vld [vmem:[%s3721_s28] ss:$0 sm:$0xff] }
 0x3eb   : > { %v1552_v20 = vpack.c.bf16 %v1548_v16, %v1547_v15  ;;  %v2620_v15 = vld [vmem:[%s3720_s23] ss:$0 sm:$0xff]  ;;  %s3725_s23 = scalar_lea.vmem (!%p901_p1), %s3675_s21, %s3208_s27 }
 0x3ec   : > { %v1551_v21 = vpack.c.bf16 %v1546_v19, %v1545_v18  ;;  %v1892_v19 = vstv %s1891_s8  ;;  %s3724_s8 = scalar_lea.vmem (!%p901_p1), %s3672_s18, %s3208_s27 }
 0x3ed   : > { %vm3456_vm4 = vcmp.eq.s32.totalorder %v1892_v19, 1  ;;  %v1922_v19 = vld [vmem:[#allocation3] sm:$0xff] (!%p901_p1) }
 0x3ee   : > { %2836 = vmatprep.mubr.bf16.mxu0 %v1551_v21 }
 0x3ef   : > { %2837 = vmatmul.mubr.bf16.gmra.mrb[24].mxu0 %v1552_v20 }
 0x4ba   : > { %v2834_v29 = vpop.f32.mrb[20].mxu0 }
 0x4bb   : > { %v1691_v32 = vmul.f32 %v2834_v29, %v2610_v28  ;;  %v1651_v33 = vpop.f32.mrb[21].mxu0  ;;  %v3021_v29 = vld [vmem:[%s3258_s29 + $0x30] sm:$0xff] (!%p901_p1)  }
 0x4bc   : > { %v1689_v34 = vmul.f32 %v2610_v28, %v1651_v33  ;;  %v2835_v35 = vpop.f32.mrb[22].mxu0 }
 0x4bd   : > { %v1706_v36 = vadd.f32 %v2611_v31, %v1691_v32  ;;  %v1692_v37 = vmul.f32 %v2835_v35, %v2610_v28  ;;  %v1654_v38 = vpop.f32.mrb[23].mxu0 }
 0x4be   : > { %v1704_v39 = vadd.f32 %v2611_v31, %v1689_v34  ;;  %v1690_v40 = vmul.f32 %v2610_v28, %v1654_v38 }
 0x4bf   : > { %v1707_v41 = vadd.f32 %v2611_v31, %v1692_v37  ;;  %v1714_v43 = vmax.f32 %v1706_v36, 0.0 }
 0x4c0   : > { %v1705_v42 = vadd.f32 %v2611_v31, %v1690_v40  ;;  %v1712_v45 = vmax.f32 %v1704_v39, 0.0 }
 0x4c1   : > { %v1715_v44 = vmax.f32 %v1707_v41, 0.0 }
 0x4c2   : > { %v1713_v46 = vmax.f32 %v1705_v42, 0.0  ;;  %v2838_v47 = vpop.f32.mrb[24].mxu0 }
 0x4c3   : > { %v1721_v48 = vpack.c.bf16 %v1715_v44, %v1714_v43  ;;  %v1695_v54 = vmul.f32 %v2838_v47, %v2610_v28  ;;  %v1667_v56 = vpop.f32.mrb[25].mxu0 }
 0x4c4   : > { %v1693_v57 = vmul.f32 %v2610_v28, %v1667_v56  ;;  %v2839_v58 = vpop.f32.mrb[26].mxu0  ;;  %v1720_v59 = vpack.c.bf16 %v1713_v46, %v1712_v45 }
 0x4c5   : > { %v1710_v60 = vadd.f32 %v2611_v31, %v1695_v54  ;;  %v1696_v61 = vmul.f32 %v2839_v58, %v2610_v28  ;;  %v1670_v62 = vpop.f32.mrb[27].mxu0 }
 0x4c6   : > { %v1708_v5 = vadd.f32 %v2611_v31, %v1693_v57  ;;  %v1694_v6 = vmul.f32 %v2610_v28, %v1670_v62  ;;  %2856 = vmatprep.mubr.bf16.mxu1 %v1720_v59 }
 0x4c7   : > { %v1711_v7 = vadd.f32 %v2611_v31, %v1696_v61  ;;  %2857 = vmatmul.mubr.bf16.vlgmr.msra.gmra.mrb[4].mxu1 %v1721_v48  ;;  %v1718_v9 = vmax.f32 %v1710_v60, 0.0 }
 0x4c8   : > { %v1709_v8 = vadd.f32 %v2611_v31, %v1694_v6  ;;  %v1716_v11 = vmax.f32 %v1708_v5, 0.0 }
 0x4c9   : > { %v1719_v10 = vmax.f32 %v1711_v7, 0.0 }
 0x4ca   : > { %v1717_v12 = vmax.f32 %v1709_v8, 0.0 }
 0x4cb   : > { %v1723_v13 = vpack.c.bf16 %v1719_v10, %v1718_v9 }
 0x4cc   : > { %v1722_v14 = vpack.c.bf16 %v1717_v12, %v1716_v11 }
 0x4ce   : > { %2860 = vmatprep.mubr.bf16.mxu1 %v1722_v14  ;;  %v3016_v14 = vld [vmem:[%s3258_s29 + $0x8] sm:$0xff] (!%p901_p1)  }
 0x4cf   : > { %2861 = vmatmul.mubr.bf16.gmra.mrb[8].mxu1 %v1723_v13 }
 0x59a   : > { %v2858_v16 = vpop.f32.mrb[4].mxu1 }
 0x59b   : > { %v1862_v18 = vmul.f32 %v2858_v16, %v2620_v15  ;;  %v1822_v20 = vpop.f32.mrb[5].mxu1  ;;  %v3018_v16 = vld [vmem:[%s3258_s29 + $0x18] sm:$0xff] (!%p901_p1)  }
 0x59c   : > { %v1860_v21 = vmul.f32 %v2620_v15, %v1822_v20  ;;  %v2859_v22 = vpop.f32.mrb[6].mxu1 }
 0x59d   : > { %v1877_v24 = vadd.f32 %v2621_v17, %v1862_v18  ;;  %v1863_v27 = vmul.f32 %v2859_v22, %v2620_v15  ;;  %v1825_v28 = vpop.f32.mrb[7].mxu1  ;;  %v3020_v18 = vld [vmem:[%s3258_s29 + $0x28] sm:$0xff] (!%p901_p1)  }
 0x59e   : > { %v1875_v31 = vadd.f32 %v2621_v17, %v1860_v21  ;;  %v1861_v32 = vmul.f32 %v2620_v15, %v1825_v28 }
 0x59f   : > { %v1885_v33 = vmax.f32 %v1877_v24, 0.0  ;;  %v1878_v34 = vadd.f32 %v2621_v17, %v1863_v27 }
 0x5a0   : > { %v1883_v35 = vmax.f32 %v1875_v31, 0.0  ;;  %v1876_v36 = vadd.f32 %v2621_v17, %v1861_v32  ;;  %v2632_v32 = vld [vmem:[%s885_s4] ss:$0 sm:$0xff] (!%p901_p1) }
 0x5a1   : > { %v1896_v37 = vsel %vm3456_vm4, %v1877_v24, %v1885_v33  ;;  %v1886_v38 = vmax.f32 %v1878_v34, 0.0 }
 0x5a2   : > { %v3463_v39 = vadd.f32 %v1896_v37, %v3367_v52  ;;  %v1894_v40 = vsel %vm3456_vm4, %v1875_v31, %v1883_v35  ;;  %v1884_v41 = vmax.f32 %v1876_v36, 0.0  ;;  %v2862_v42 = vpop.f32.mrb[8].mxu1  ;;  %v3022_v31 = vld [vmem:[%s3258_s29 + $0x38] sm:$0xff] (!%p901_p1)  }
 0x5a3   : > { %v3468_v43 = vadd.f32 %v1894_v40, %v3361_v49  ;;  %v1897_v44 = vsel %vm3456_vm4, %v1878_v34, %v1886_v38  ;;  %v1866_v45 = vmul.f32 %v2862_v42, %v2620_v15  ;;  %v1838_v46 = vpop.f32.mrb[9].mxu1  ;;  %v2633_v34 = vld [vmem:[%s3724_s8] ss:$0 sm:$0xff] (!%p901_p1) }
 0x5a4   : > { %1912 = vst [vmem:[#allocation2 + $0x10] sm:$0xff] %v3463_v39  ;;  %v3474_v47 = vadd.f32 %v1897_v44, %v3363_v50  ;;  %v1895_v52 = vsel %vm3456_vm4, %v1876_v36, %v1884_v41  ;;  %v1864_v48 = vmul.f32 %v2620_v15, %v1838_v46  ;;  %v2863_v54 = vpop.f32.mrb[10].mxu1  ;;  %v2642_v44 = vld [vmem:[%s896_s9] ss:$0 sm:$0xff] (!%p901_p1) }
 0x5a5   : > { %1910 = vst [vmem:[#allocation2] sm:$0xff] %v3468_v43  ;;  %v3480_v49 = vadd.f32 %v1895_v52, %v3365_v51  ;;  %v1881_v56 = vadd.f32 %v2621_v17, %v1866_v45  ;;  %v1867_v57 = vmul.f32 %v2863_v54, %v2620_v15  ;;  %v1841_v58 = vpop.f32.mrb[11].mxu1  ;;  %v2643_v46 = vld [vmem:[%s3725_s23] ss:$0 sm:$0xff] (!%p901_p1) }
 0x5a6   : > { %1913 = vst [vmem:[#allocation2 + $0x18] sm:$0xff] %v3474_v47  ;;  %v1879_v59 = vadd.f32 %v2621_v17, %v1864_v48  ;;  %v1865_v60 = vmul.f32 %v2620_v15, %v1841_v58  ;;  %v3017_v15 = vld [vmem:[%s3258_s29 + $0x10] sm:$0xff] (!%p901_p1)  }
 0x5a7   : > { %1911 = vst [vmem:[#allocation2 + $0x8] sm:$0xff] %v3480_v49  ;;  %v1889_v50 = vmax.f32 %v1881_v56, 0.0  ;;  %v1882_v61 = vadd.f32 %v2621_v17, %v1867_v57 }
 0x5a8   : > { %v1887_v62 = vmax.f32 %v1879_v59, 0.0  ;;  %v1880_v5 = vadd.f32 %v2621_v17, %v1865_v60  ;;  %v3019_v17 = vld [vmem:[%s3258_s29 + $0x20] sm:$0xff] (!%p901_p1)  }
 0x5a9   : > { %v1900_v6 = vsel %vm3456_vm4, %v1881_v56, %v1889_v50  ;;  %v1890_v7 = vmax.f32 %v1882_v61, 0.0  ;;  %1921 = sbr.rel (%p901_p1) target bundleno = 2123 (0x84b), region = 120 }
 0x5aa   : > { %v3487_v51 = vadd.f32 %v1900_v6, %v3387_v2  ;;  %v1898_v8 = vsel %vm3456_vm4, %v1879_v59, %v1887_v62  ;;  %v1888_v9 = vmax.f32 %v1880_v5, 0.0 }
 0x5ab   : > { %v3492_v10 = vadd.f32 %v1898_v8, %v3380_v63  ;;  %v1901_v11 = vsel %vm3456_vm4, %v1882_v61, %v1890_v7  ;;  %v3053_v63 = vmov (!%p901_p1), 0.0  }
 0x5ac   : > { %1916 = vst [vmem:[#allocation2 + $0x30] sm:$0xff] %v3487_v51  ;;  %v3498_v12 = vadd.f32 %v1901_v11, %v3382_v0  ;;  %v1899_v13 = vsel %vm3456_vm4, %v1880_v5, %v1888_v9  ;;  %2864 = vmatprep.subr.bf16.mxu0 (!%p901_p1), %v3053_v63  ;;  %2872 = vmatprep.mubr.msk.bf16.mxu0 (!%p901_p1), %vm3054_vm5, %v3053_v63  ;;  %v3007_v0 = vld [vmem:[%s3245_s10] sm:$0xff] (!%p901_p1)  }
 0x5ad   : > { %1914 = vst [vmem:[#allocation2 + $0x20] sm:$0xff] %v3492_v10  ;;  %v3504_v2 = vadd.f32 %v1899_v13, %v3384_v1  ;;  %2865 = vmatpush3.bf16.msra.mxu0 (!%p901_p1), %v3371_v53  ;;  %2876 = vmatprep.subr.bf16.mxu1 (!%p901_p1), %v3053_v63  ;;  %v3008_v1 = vld [vmem:[%s3245_s10 + $0x8] sm:$0xff] (!%p901_p1)   ;;  %v3010_v53 = vld [vmem:[%s3245_s10 + $0x18] sm:$0xff] (!%p901_p1)  }
 0x5ae   : > { %1917 = vst [vmem:[#allocation2 + $0x38] sm:$0xff] %v3498_v12  ;;  %2866 = vmatprep.subr.bf16.mxu0 (!%p901_p1), %v3053_v63  ;;  %2877 = vmatpush3.bf16.msra.mxu1 (!%p901_p1), %v3007_v0 }
 0x5af   : > { %1915 = vst [vmem:[#allocation2 + $0x28] sm:$0xff] %v3504_v2  ;;  %2878 = vmatprep.subr.bf16.mxu1 (!%p901_p1), %v3053_v63  ;;  %2892 = vmatprep.mubr.msk.bf16.mxu1 (!%p901_p1), %vm3054_vm5, %v3053_v63 }
 0x5b1   : > { %2867 = vmatpush3.bf16.msra.mxu0 %v3376_v55  ;;  %v1935_v55 = vpop.trf.xlu0 }
 0x5b2   : > { %2868 = vmatprep.subr.bf16.mxu0 %v3053_v63  ;;  %2879 = vmatpush3.bf16.msra.mxu1 %v3008_v1 }
 0x5b3   : > { %2880 = vmatprep.subr.bf16.mxu1 %v3053_v63 }
 0x5b5   : > { %2869 = vmatpush3.bf16.msra.mxu0 %v3391_v3  ;;  %v3014_v3 = vld [vmem:[%s3245_s10 + $0x38] sm:$0xff]  }
 0x5b6   : > { %2870 = vmatprep.subr.bf16.mxu0 %v3053_v63  ;;  %2881 = vmatpush3.bf16.msra.mxu1 %v3009_v23 }
 0x5b7   : > { %2882 = vmatprep.subr.bf16.mxu1 %v3053_v63 }
 0x5b9   : > { %2871 = vmatpush3.bf16.msra.mxu0 %v3396_v4  ;;  %v3015_v4 = vld [vmem:[%s3258_s29] sm:$0xff]  }
 0x5ba   : > { %2883 = vmatpush3.bf16.msra.mxu1 %v3010_v53  ;;  %2896 = vmatprep.subr.bf16.mxu0 %v3053_v63 }
 0x5bb   : > { %2884 = vmatprep.subr.bf16.mxu1 %v3053_v63 }
 0x5bc   : > { %2873 = vmatmul.mubr.msk.bf16.vlgmr.msra.gmra.mrb[0].mxu0 %vm1358_vm2, %v1935_v55 }
 0x5bd   : > { %2912 = vmatprep.mubr.msk.bf16.mxu0 %vm3054_vm5, %v3053_v63  ;;  %2897 = vmatpush3.bf16.msra.mxu0 %v3015_v4 }
 0x5be   : > { %2885 = vmatpush3.bf16.msra.mxu1 %v3011_v25  ;;  %2898 = vmatprep.subr.bf16.mxu0 %v3053_v63 }
 0x5bf   : > { %2886 = vmatprep.subr.bf16.mxu1 %v3053_v63 }
 0x5c1   : > { %2899 = vmatpush3.bf16.msra.mxu0 %v3016_v14 }
 0x5c2   : > { %2887 = vmatpush3.bf16.msra.mxu1 %v3012_v26  ;;  %2900 = vmatprep.subr.bf16.mxu0 %v3053_v63 }
 0x5c3   : > { %2888 = vmatprep.subr.bf16.mxu1 %v3053_v63 }
 0x5c5   : > { %2901 = vmatpush3.bf16.msra.mxu0 %v3017_v15 }
 0x5c6   : > { %2889 = vmatpush3.bf16.msra.mxu1 %v3013_v30  ;;  %2902 = vmatprep.subr.bf16.mxu0 %v3053_v63 }
 0x5c7   : > { %2890 = vmatprep.subr.bf16.mxu1 %v3053_v63 }
 0x5c9   : > { %2903 = vmatpush3.bf16.msra.mxu0 %v3018_v16 }
 0x5ca   : > { %2891 = vmatpush3.bf16.msra.mxu1 %v3014_v3  ;;  %2904 = vmatprep.subr.bf16.mxu0 %v3053_v63 }
 0x5cd   : > { %2905 = vmatpush3.bf16.msra.mxu0 %v3019_v17 }
 0x5ce   : > { %2906 = vmatprep.subr.bf16.mxu0 %v3053_v63 }
 0x5d1   : > { %2907 = vmatpush3.bf16.msra.mxu0 %v3020_v18 }
 0x5d2   : > { %2908 = vmatprep.subr.bf16.mxu0 %v3053_v63 }
 0x5d5   : > { %2909 = vmatpush3.bf16.msra.mxu0 %v3021_v29 }
 0x5d6   : > { %2910 = vmatprep.subr.bf16.mxu0 %v3053_v63 }
 0x5d9   : > { %2911 = vmatpush3.bf16.msra.mxu0 %v3022_v31 }
 0x68f   : > { %v1980_v20 = vpop.f32.mrb[0].mxu0 }
 0x690   : > { %v1981_v21 = vadd.f32 %v1980_v20, %v1922_v19  ;;  %v2874_v22 = vpop.f32.mrb[1].mxu0 }
 0x691   : > { %v1983_v24 = vpop.f32.mrb[2].mxu0 }
 0x692   : > { %v1986_v27 = vpack.c.bf16 %v1981_v21, %v1981_v21  ;;  %v2875_v28 = vpop.f32.mrb[3].mxu0 }
 0x694   : > { %2893 = vmatmul.mubr.bf16.vlgmr.msra.gmra.mrb[0].mxu1 %v1986_v27 }
 0x767   : > { %v2085_v33 = vpop.f32.mrb[0].mxu1 }
 0x768   : > { %v2098_v35 = vmul.f32 %v2632_v32, %v2085_v33  ;;  %v2894_v36 = vpop.f32.mrb[1].mxu1 }
 0x769   : > { %v2088_v37 = vpop.f32.mrb[2].mxu1 }
 0x76a   : > { %v2106_v38 = vadd.f32 %v2633_v34, %v2098_v35  ;;  %v2895_v40 = vpop.f32.mrb[3].mxu1 }
 0x76c   : > { %v2107_v41 = vmax.f32 %v2106_v38, 0.0 }
 0x76e   : > { %v2108_v42 = vpack.c.bf16 %v2107_v41, %v2107_v41 }
 0x770   : > { %2913 = vmatmul.mubr.bf16.vlgmr.msra.gmra.mrb[4].mxu0 %v2108_v42 }
 0x843   : > { %v2207_v45 = vpop.f32.mrb[4].mxu0 }
 0x844   : > { %v2220_v52 = vmul.f32 %v2642_v44, %v2207_v45  ;;  %v2914_v48 = vpop.f32.mrb[5].mxu0 }
 0x845   : > { %v2210_v54 = vpop.f32.mrb[6].mxu0 }
 0x846   : > { %v2228_v56 = vadd.f32 %v2643_v46, %v2220_v52  ;;  %v2915_v57 = vpop.f32.mrb[7].mxu0 }
 0x848   : > { %v2229_v58 = vmax.f32 %v2228_v56, 0.0 }
 0x84a   : > { %2230 = vst [vmem:[#allocation3] sm:$0xff] %v2229_v58 }
 0x84b PF: > { %p2644_p3 = scmp.ne.s32.totalorder %s3182_s30, 1 }
 0x84c   : > { %s3726_s9 = sld [smem:[#allocation9_spill]] (!%p2644_p3)  ;;  %s3727_s8 = sld [smem:[#allocation21_spill]] (!%p2644_p3)  ;;  %v3055_v61 = vmov (!%p2644_p3), 0   ;;  %vm2362_vm4 = vcmask (!%p2644_p3), 1041409  }
 0x84d   : > { %2233 = sbr.rel (%p2644_p3) target bundleno = 2290 (0x8f2), region = 124  ;;  %3024 = vset.pattern.permute.xlu1 (!%p2644_p3), %v3055_v61  ;;  %3023 = vset.pattern.permute.xlu0 (!%p2644_p3), %v3055_v61  ;;  %s3728_s1 = sld [smem:[#allocation22_spill]] (!%p2644_p3) }
 0x852   : > { %v2244_v59 = vld [vmem:[%s3726_s9 + $0x10] sm:$0xff] (!%p2644_p3)  ;;  %v2242_v60 = vld [vmem:[%s3726_s9] sm:$0xff] (!%p2644_p3)  ;;  %v2245_v50 = vld [vmem:[%s3726_s9 + $0x18] sm:$0xff] (!%p2644_p3)  ;;  %2234 = vst [vmem:[%s3727_s8] sm:$0xff] (!%p2644_p3), %v3468_v43 }
 0x853   : > { %2235 = vst [vmem:[%s3727_s8 + $0x8] sm:$0xff] (!%p2644_p3), %v3480_v49  ;;  %2236 = vst [vmem:[%s3727_s8 + $0x10] sm:$0xff] (!%p2644_p3), %v3463_v39  ;;  %vm2252_vm6 = vcmp.gt.f32.partialorder (!%p2644_p3), %v2244_v59, 0.5  ;;  %vm2250_vm7 = vcmp.gt.f32.partialorder (!%p2644_p3), %v2242_v60, 0.5  ;;  %vm2253_vm8 = vcmp.gt.f32.partialorder (!%p2644_p3), %v2245_v50, 0.5  ;;  %v2243_v62 = vld [vmem:[%s3726_s9 + $0x8] sm:$0xff] (!%p2644_p3) }
 0x854   : > { %2237 = vst [vmem:[%s3727_s8 + $0x18] sm:$0xff] %v3474_v47  ;;  %2238 = vst [vmem:[%s3727_s8 + $0x20] sm:$0xff] %v3492_v10  ;;  %v2260_v5 = vsel %vm2252_vm6, 1, %v3055_v61  ;;  %v2258_v6 = vsel %vm2250_vm7, 1, %v3055_v61  ;;  %vm2251_vm9 = vcmp.gt.f32.partialorder %v2243_v62, 0.5  ;;  %v2247_v7 = vld [vmem:[%s3726_s9 + $0x28] sm:$0xff] }
 0x855   : > { %2239 = vst [vmem:[%s3727_s8 + $0x28] sm:$0xff] %v3504_v2  ;;  %2240 = vst [vmem:[%s3727_s8 + $0x30] sm:$0xff] %v3487_v51  ;;  %v2246_v8 = vld [vmem:[%s3726_s9 + $0x20] sm:$0xff]  ;;  %2273 = vperm.xlu1 %3024, %v2260_v5   ;;  %2267 = vperm.xlu0 %3023, %v2258_v6   ;;  %v2261_v9 = vsel %vm2253_vm8, 1, %v3055_v61  ;;  %v2259_v11 = vsel %vm2251_vm9, 1, %v3055_v61  ;;  %vm2255_vm10 = vcmp.gt.f32.partialorder %v2247_v7, 0.5 }
 0x856   : > { %2241 = vst [vmem:[%s3727_s8 + $0x38] sm:$0xff] %v3498_v12  ;;  %vm2254_vm11 = vcmp.gt.f32.partialorder %v2246_v8, 0.5  ;;  %v2249_v13 = vld [vmem:[%s3726_s9 + $0x38] sm:$0xff]  ;;  %v2248_v63 = vld [vmem:[%s3726_s9 + $0x30] sm:$0xff]  ;;  %v2263_v0 = vsel %vm2255_vm10, 1, %v3055_v61  ;;  %vm2364_vm7 = vcmask 1042434  }
 0x857   : > { %v2262_v1 = vsel %vm2254_vm11, 1, %v3055_v61  ;;  %vm2257_vm12 = vcmp.gt.f32.partialorder %v2249_v13, 0.5  ;;  %vm2256_vm13 = vcmp.gt.f32.partialorder %v2248_v63, 0.5  ;;  %vm2366_vm8 = vcmask 1043459  }
 0x858   : > { %v2265_v23 = vsel %vm2257_vm12, 1, %v3055_v61  ;;  %v2264_v53 = vsel %vm2256_vm13, 1, %v3055_v61  ;;  %vm2368_vm9 = vcmask 1044484   ;;  %vm2370_vm10 = vcmask 1045509  }
 0x859   : > { %2276 = vperm.xlu1 %3024, %v2261_v9   ;;  %2270 = vperm.xlu0 %3023, %v2259_v11   ;;  %vm2372_vm11 = vcmask 1046534   ;;  %vm2374_vm12 = vcmask 1047559  }
 0x85d   : > { %2282 = vperm.xlu1 %3024, %v2263_v0   ;;  %2279 = vperm.xlu0 %3023, %v2262_v1  }
 0x861   : > { %2288 = vperm.xlu1 %3024, %v2265_v23   ;;  %2285 = vperm.xlu0 %3023, %v2264_v53  }
 0x8d4   : > { %v2274_v25 = vpop.permute.xlu1 %2273  ;;  %v2268_v26 = vpop.permute.xlu0 %2267 }
 0x8d5   : > { %vm2292_vm14 = vcmp.eq.s32.totalorder %v2274_v25, 1  ;;  %vm2290_vm15 = vcmp.eq.s32.totalorder %v2268_v26, 1 }
 0x8d6   : > { %v2300_v30 = vsel %vm2292_vm14, %v3463_v39, -3e+38  ;;  %v2298_v55 = vsel %vm2290_vm15, %v3468_v43, -3e+38 }
 0x8d7   : > { %v2318_v3 = vrot.slane %v2300_v30, 4  ;;  %v2306_v4 = vrot.slane %v2298_v55, 4 }
 0x8d8   : > { %v2277_v14 = vpop.permute.xlu1 %2276  ;;  %v2271_v15 = vpop.permute.xlu0 %2270 }
 0x8d9   : > { %v2319_v16 = vmax.f32 %v2300_v30, %v2318_v3  ;;  %v2307_v17 = vmax.f32 %v2298_v55, %v2306_v4  ;;  %vm2293_vm0 = vcmp.eq.s32.totalorder %v2277_v14, 1  ;;  %vm2291_vm1 = vcmp.eq.s32.totalorder %v2271_v15, 1 }
 0x8da   : > { %v2301_v18 = vsel %vm2293_vm0, %v3474_v47, -3e+38  ;;  %v2299_v19 = vsel %vm2291_vm1, %v3480_v49, -3e+38 }
 0x8db   : > { %v2320_v20 = vrot.slane %v2319_v16, 2  ;;  %v2308_v21 = vrot.slane %v2307_v17, 2  ;;  %v2324_v22 = vrot.slane %v2301_v18, 4  ;;  %v2312_v24 = vrot.slane %v2299_v19, 4 }
 0x8dc   : > { %v2283_v27 = vpop.permute.xlu1 %2282  ;;  %v2280_v39 = vpop.permute.xlu0 %2279 }
 0x8dd   : > { %v2321_v28 = vmax.f32 %v2319_v16, %v2320_v20  ;;  %v2309_v43 = vmax.f32 %v2307_v17, %v2308_v21  ;;  %v2325_v29 = vmax.f32 %v2301_v18, %v2324_v22  ;;  %v2313_v31 = vmax.f32 %v2299_v19, %v2312_v24 }
 0x8de   : > { %vm2295_vm2 = vcmp.eq.s32.totalorder %v2283_v27, 1  ;;  %vm2294_vm3 = vcmp.eq.s32.totalorder %v2280_v39, 1 }
 0x8df   : > { %v2326_v32 = vrot.slane %v2325_v29, 2  ;;  %v2314_v33 = vrot.slane %v2313_v31, 2  ;;  %v2303_v34 = vsel %vm2295_vm2, %v3504_v2, -3e+38  ;;  %v2302_v47 = vsel %vm2294_vm3, %v3492_v10, -3e+38 }
 0x8e0   : > { %v2289_v49 = vpop.permute.xlu1 %2288  ;;  %v2286_v35 = vpop.permute.xlu0 %2285  ;;  %v2322_v36 = vrot.slane %v2321_v28, 1  ;;  %v2310_v37 = vrot.slane %v2309_v43, 1  ;;  %v2336_v41 = vrot.slane %v2303_v34, 4  ;;  %v2330_v42 = vrot.slane %v2302_v47, 4 }
 0x8e1   : > { %v2327_v38 = vmax.f32 %v2325_v29, %v2326_v32  ;;  %v2315_v40 = vmax.f32 %v2313_v31, %v2314_v33  ;;  %vm2297_vm5 = vcmp.eq.s32.totalorder %v2289_v49, 1  ;;  %vm2296_vm6 = vcmp.eq.s32.totalorder %v2286_v35, 1 }
 0x8e2   : > { %v2305_v45 = vsel %vm2297_vm5, %v3498_v12, -3e+38  ;;  %v2304_v46 = vsel %vm2296_vm6, %v3487_v51, -3e+38  ;;  %v2337_v52 = vmax.f32 %v2303_v34, %v2336_v41  ;;  %v2331_v2 = vmax.f32 %v2302_v47, %v2330_v42 }
 0x8e3   : > { %v2316_v44 = vrot.slane %v2315_v40, 1  ;;  %v2348_v48 = vrot.slane %v2305_v45, 4  ;;  %v2342_v10 = vrot.slane %v2304_v46, 4  ;;  %v2323_v54 = vmax.f32 %v2321_v28, %v2322_v36 }
 0x8e4   : > { %v2311_v56 = vmax.f32 %v2309_v43, %v2310_v37  ;;  %v2328_v57 = vrot.slane %v2327_v38, 1  ;;  %v2338_v59 = vrot.slane %v2337_v52, 2  ;;  %v2332_v60 = vrot.slane %v2331_v2, 2 }
 0x8e5   : > { %v2317_v58 = vmax.f32 %v2315_v40, %v2316_v44  ;;  %v2349_v50 = vmax.f32 %v2305_v45, %v2348_v48  ;;  %v2343_v61 = vmax.f32 %v2304_v46, %v2342_v10 }
 0x8e6   : > { %v2339_v12 = vmax.f32 %v2337_v52, %v2338_v59  ;;  %v2333_v6 = vmax.f32 %v2331_v2, %v2332_v60  ;;  %v2329_v7 = vmax.f32 %v2327_v38, %v2328_v57 }
 0x8e7   : > { %v2363_v62 = vsel %vm2362_vm4, %v2317_v58, %v2311_v56  ;;  %v2350_v51 = vrot.slane %v2349_v50, 2  ;;  %v2344_v8 = vrot.slane %v2343_v61, 2 }
 0x8e8   : > { %v2365_v5 = vsel %vm2364_vm7, %v2323_v54, %v2363_v62  ;;  %v2340_v9 = vrot.slane %v2339_v12, 1  ;;  %v2334_v11 = vrot.slane %v2333_v6, 1 }
 0x8e9   : > { %v2351_v13 = vmax.f32 %v2349_v50, %v2350_v51  ;;  %v2367_v63 = vsel %vm2366_vm8, %v2329_v7, %v2365_v5  ;;  %v2345_v0 = vmax.f32 %v2343_v61, %v2344_v8 }
 0x8ea   : > { %v2341_v1 = vmax.f32 %v2339_v12, %v2340_v9  ;;  %v2335_v23 = vmax.f32 %v2333_v6, %v2334_v11 }
 0x8eb   : > { %v2352_v53 = vrot.slane %v2351_v13, 1  ;;  %v2346_v25 = vrot.slane %v2345_v0, 1 }
 0x8ec   : > { %v2369_v26 = vsel %vm2368_vm9, %v2335_v23, %v2367_v63 }
 0x8ed   : > { %v2353_v30 = vmax.f32 %v2351_v13, %v2352_v53  ;;  %v2347_v55 = vmax.f32 %v2345_v0, %v2346_v25  ;;  %v2371_v3 = vsel %vm2370_vm10, %v2341_v1, %v2369_v26 }
 0x8ef   : > { %v2373_v4 = vsel %vm2372_vm11, %v2347_v55, %v2371_v3 }
 0x8f0   : > { %v2375_v14 = vsel %vm2374_vm12, %v2353_v30, %v2373_v4 }
 0x8f1   : > { %2377 = vst [vmem:[%s3728_s1] sm:$0xff] %v2375_v14 }
 0x8f2 PF: > { %s3729_s2 = sld [smem:[#allocation7_spill]] }
 0x8f8   : > { %s35_s4 = sadd.s32 1, %s3729_s2  }
 0x8f9   : > { %p32_p4 = scmp.ge.s32.totalorder %s35_s4, 4  }
 0x8fb   :  { %34 = sbr.rel (!%p32_p4) target bundleno = 17 (0x11), region = 195 }
 0x902   :  { %2395 = vsyncpa [#allocation5], 1 }
 0x903   :  { %2397 = vsyncpa [#allocation5 + $0x1], 1 }

</bundles_post_ra>
